<compile_context>
chip_gen: v5e
topology: v5e:2x2
jax: 0.10.0
libtpu: 0.0.40
codegen_flags: <defaults>
</compile_context>

<pallas_src>
import functools

import jax
import jax.numpy as jnp
from jax import lax
from jax.experimental import pallas as pl
from jax.experimental.pallas import tpu as pltpu


# ----------------------------- shared math helper -----------------------------

def _layernorm(x, g, b, eps=1e-5):
    # PyTorch LayerNorm: biased variance over the last dim.
    mu = jnp.mean(x, axis=-1, keepdims=True)
    var = jnp.mean((x - mu) ** 2, axis=-1, keepdims=True)
    return (x - mu) * lax.rsqrt(var + eps) * g + b


# ------------------------------- fused kernel ---------------------------------
# grid = (B, L): axis 0 = batch ("parallel"), axis 1 = layer ("arbitrary").
# The (T, E) activation for the current batch element is carried across layer
# steps in a VMEM scratch ref.

def gpt_layer_kernel(x_ref,
                     wqkv_ref, bqkv_ref, wo_ref, bo_ref,
                     ln1g_ref, ln1b_ref, w1_ref, b1_ref, w2_ref, b2_ref,
                     ln2g_ref, ln2b_ref,
                     lng_ref, lnb_ref, wh_ref, bh_ref,
                     o_ref, act_ref, *, n_heads):
    l = pl.program_id(1)
    n_layers = pl.num_programs(1)

    @pl.when(l == 0)
    def _():
        act_ref[...] = x_ref[0]                       # load embeddings for this batch

    x = act_ref[...]                                  # (T, E) float32
    T, E = x.shape
    hd = E // n_heads

    # ---- multi-head self-attention (head-batched, batch-leading einsums) ----
    # wqkv_ref[0]: (H, E, 3*hd) bf16, Q columns pre-scaled by 1/sqrt(hd).
    xb = jnp.broadcast_to(x.astype(jnp.bfloat16), (n_heads, T, E))
    qkv = jnp.einsum("hte,hef->htf", xb, wqkv_ref[0],
                     preferred_element_type=jnp.float32) + bqkv_ref[0]   # (H,T,3hd) f32
    q = qkv[..., :hd].astype(jnp.bfloat16)            # (H, T, hd)
    k = qkv[..., hd:2 * hd].astype(jnp.bfloat16)
    v = qkv[..., 2 * hd:].astype(jnp.bfloat16)

    s = jnp.einsum("hqd,hkd->hqk", q, k,
                   preferred_element_type=jnp.float32)                    # (H, T, T)
    s = s - jnp.max(s, axis=-1, keepdims=True)        # softmax in f32
    p = jnp.exp(s)
    p = p / jnp.sum(p, axis=-1, keepdims=True)        # exact divide

    attn = jnp.einsum("hqk,hkd->hqd", p.astype(jnp.bfloat16), v,
                      preferred_element_type=jnp.float32)                 # (H, T, hd)
    # Head merge folded into the out-projection: wo_ref[0] is (H, hd, E).
    proj = jnp.einsum("hqd,hde->hqe", attn.astype(jnp.bfloat16), wo_ref[0],
                      preferred_element_type=jnp.float32)                 # (H, T, E)
    attn_out = jnp.sum(proj, axis=0) + bo_ref[0]                          # (T, E)

    # Post-norm residual 1.
    y = _layernorm(x + attn_out, ln1g_ref[0], ln1b_ref[0])

    # ---- feed-forward: Linear -> ReLU -> Linear ----
    h1 = jnp.dot(y.astype(jnp.bfloat16), w1_ref[0],
                 preferred_element_type=jnp.float32) + b1_ref[0]
    h1 = jnp.maximum(h1, 0.0)
    ff = jnp.dot(h1.astype(jnp.bfloat16), w2_ref[0],
                 preferred_element_type=jnp.float32) + b2_ref[0]

    # Post-norm residual 2 -> carried activation.
    out = _layernorm(y + ff, ln2g_ref[0], ln2b_ref[0])
    act_ref[...] = out

    @pl.when(l == n_layers - 1)
    def _():
        # Final LayerNorm + vocab head; the only HBM store, lane-dense (T, V=128).
        z = _layernorm(out, lng_ref[...], lnb_ref[...])
        o_ref[0] = jnp.dot(z.astype(jnp.bfloat16), wh_ref[...],
                           preferred_element_type=jnp.float32) + bh_ref[...]


# ----------------------------- host-side packing -------------------------------

def pack_params(params, n_heads):
    """Layer-stacked, pre-transposed, head-split, scale-folded, bf16 matmul weights."""
    layers = params["layers"]
    E = params["tok_emb"].shape[1]
    hd = E // n_heads
    scale = 1.0 / float(hd) ** 0.5
    wdt = jnp.bfloat16

    def per_head_qkv_w(w):                # w: (3E, E) torch in_proj layout
        wt = w.T.reshape(E, 3, n_heads, hd)               # cols -> (qkv, head, hd)
        wt = jnp.transpose(wt, (2, 0, 1, 3)).reshape(n_heads, E, 3 * hd)
        return wt.at[..., :hd].multiply(scale)            # fold 1/sqrt(hd) into Q

    def per_head_qkv_b(b):                # b: (1, 3E)
        bt = b.reshape(3, n_heads, hd)
        bt = jnp.transpose(bt, (1, 0, 2)).reshape(n_heads, 1, 3 * hd)
        return bt.at[..., :hd].multiply(scale)

    stk = lambda key: jnp.stack([lp[key] for lp in layers])           # noqa: E731

    return {
        "wqkv": jnp.stack([per_head_qkv_w(lp["wqkv"]) for lp in layers]).astype(wdt),
        "bqkv": jnp.stack([per_head_qkv_b(lp["bqkv"]) for lp in layers]),
        "wo":   jnp.stack([lp["wo"].T.reshape(n_heads, hd, E)
                           for lp in layers]).astype(wdt),             # (L, H, hd, E)
        "bo":   stk("bo"),
        "ln1g": stk("ln1g"), "ln1b": stk("ln1b"),
        "w1":   jnp.stack([lp["w1"].T for lp in layers]).astype(wdt),  # (L, E, F)
        "b1":   stk("b1"),
        "w2":   jnp.stack([lp["w2"].T for lp in layers]).astype(wdt),  # (L, F, E)
        "b2":   stk("b2"),
        "ln2g": stk("ln2g"), "ln2b": stk("ln2b"),
        "lng":  params["lng"], "lnb": params["lnb"],
        "wh":   params["wh"].T.astype(wdt),                            # (E, V)
        "bh":   params["bh"],                                          # (1, V)
    }


def _vmem_limit_bytes():
    # Never request the whole physical VMEM (v7x only has 64 MiB per TensorCore);
    # derive from the device and leave headroom for Mosaic internals / buffers.
    try:
        cap = int(pltpu.get_tpu_info().vmem_capacity_bytes)
    except Exception:
        cap = 64 * 1024 * 1024
    return int(min(cap * 3 // 4, 96 * 1024 * 1024))


# ------------------------------- model wrapper ---------------------------------

def gpt_forward(params, tokens, n_heads):
    B, T = tokens.shape
    E = params["tok_emb"].shape[1]
    V = params["wh"].shape[0]
    L = len(params["layers"])
    F = params["layers"][0]["w1"].shape[0]
    H = n_heads
    hd = E // H

    # Embedding gathers are glue (plain JAX) outside the kernel.
    x = jnp.take(params["tok_emb"], tokens, axis=0) + params["pos_emb"][:T][None, :, :]
    x = x.astype(jnp.float32)                         # (B, T, E)

    pk = pack_params(params, n_heads)

    wmap3 = lambda b, l: (l, 0, 0)                    # noqa: E731
    wmap4 = lambda b, l: (l, 0, 0, 0)                 # noqa: E731
    bmap = lambda b, l: (b, 0, 0)                     # noqa: E731
    cmap = lambda b, l: (0, 0)                        # noqa: E731

    grid_spec = pltpu.PrefetchScalarGridSpec(
        num_scalar_prefetch=0,
        grid=(B, L),
        in_specs=[
            pl.BlockSpec((1, T, E), bmap),            # x (embeddings)
            pl.BlockSpec((1, H, E, 3 * hd), wmap4),   # wqkv (per-head, scale folded)
            pl.BlockSpec((1, H, 1, 3 * hd), wmap4),   # bqkv
            pl.BlockSpec((1, H, hd, E), wmap4),       # wo (per-head)
            pl.BlockSpec((1, 1, E), wmap3),           # bo
            pl.BlockSpec((1, 1, E), wmap3),           # ln1 gamma
            pl.BlockSpec((1, 1, E), wmap3),           # ln1 beta
            pl.BlockSpec((1, E, F), wmap3),           # w1
            pl.BlockSpec((1, 1, F), wmap3),           # b1
            pl.BlockSpec((1, F, E), wmap3),           # w2
            pl.BlockSpec((1, 1, E), wmap3),           # b2
            pl.BlockSpec((1, 1, E), wmap3),           # ln2 gamma
            pl.BlockSpec((1, 1, E), wmap3),           # ln2 beta
            pl.BlockSpec((1, E), cmap),               # final LN gamma
            pl.BlockSpec((1, E), cmap),               # final LN beta
            pl.BlockSpec((E, V), cmap),               # head weight
            pl.BlockSpec((1, V), cmap),               # head bias
        ],
        out_specs=pl.BlockSpec((1, T, V), bmap),
        scratch_shapes=[pltpu.VMEM((T, E), jnp.float32)],   # layer-carried activation
    )

    kernel = functools.partial(gpt_layer_kernel, n_heads=n_heads)
    out = pl.pallas_call(
        kernel,
        out_shape=jax.ShapeDtypeStruct((B, T, V), jnp.float32),
        grid_spec=grid_spec,
        compiler_params=pltpu.CompilerParams(
            dimension_semantics=("parallel", "arbitrary"),
            vmem_limit_bytes=_vmem_limit_bytes(),
        ),
    )(x, pk["wqkv"], pk["bqkv"], pk["wo"], pk["bo"],
      pk["ln1g"], pk["ln1b"], pk["w1"], pk["b1"], pk["w2"], pk["b2"],
      pk["ln2g"], pk["ln2b"], pk["lng"], pk["lnb"], pk["wh"], pk["bh"])
    return out


# ----------------------- pure-JAX f32 reference (same math) --------------------

def gpt_forward_ref(params, tokens, n_heads):
    B, T = tokens.shape
    E = params["tok_emb"].shape[1]
    hd = E // n_heads
    x = jnp.take(params["tok_emb"], tokens, axis=0) + params["pos_emb"][:T][None, :, :]
    for lp in params["layers"]:
        qkv = x @ lp["wqkv"].T + lp["bqkv"][0]
        q, k, v = qkv[..., :E], qkv[..., E:2 * E], qkv[..., 2 * E:]
        q = q.reshape(B, T, n_heads, hd).transpose(0, 2, 1, 3)
        k = k.reshape(B, T, n_heads, hd).transpose(0, 2, 1, 3)
        v = v.reshape(B, T, n_heads, hd).transpose(0, 2, 1, 3)
        s = jnp.einsum("bhqd,bhkd->bhqk", q, k) / float(hd) ** 0.5
        p = jax.nn.softmax(s, axis=-1)
        a = jnp.einsum("bhqk,bhkd->bhqd", p, v).transpose(0, 2, 1, 3).reshape(B, T, E)
        a = a @ lp["wo"].T + lp["bo"][0]
        y = _layernorm(x + a, lp["ln1g"][0], lp["ln1b"][0])
        ff = jnp.maximum(y @ lp["w1"].T + lp["b1"][0], 0.0) @ lp["w2"].T + lp["b2"][0]
        x = _layernorm(y + ff, lp["ln2g"][0], lp["ln2b"][0])
    y = _layernorm(x, params["lng"][0], params["lnb"][0])
    return y @ params["wh"].T + params["bh"][0]


# ------------------------------- param init ------------------------------------

def init_params(key, *, vocab_size, context_length, emb_dim, n_layers, dim_ff):
    E, F, V = emb_dim, dim_ff, vocab_size

    def nrm(k, shape, scale=0.02):
        return (scale * jax.random.normal(k, shape)).astype(jnp.float32)

    def gamma(k, shape):
        return (1.0 + 0.1 * jax.random.normal(k, shape)).astype(jnp.float32)

    key, k0, k1, k2, k3, k4 = jax.random.split(key, 6)
    params = {
        "tok_emb": nrm(k0, (V, E)),
        "pos_emb": nrm(k1, (context_length, E)),
        "lng": gamma(k2, (1, E)),
        "lnb": nrm(k3, (1, E), 0.1),
        "wh": nrm(k4, (V, E)),
        "bh": None,
        "layers": [],
    }
    key, kb = jax.random.split(key)
    params["bh"] = nrm(kb, (1, V))
    for _ in range(n_layers):
        key, *lk = jax.random.split(key, 13)
        params["layers"].append({
            "wqkv": nrm(lk[0], (3 * E, E)),
            "bqkv": nrm(lk[1], (1, 3 * E)),
            "wo":   nrm(lk[2], (E, E)),
            "bo":   nrm(lk[3], (1, E)),
            "ln1g": gamma(lk[4], (1, E)),
            "ln1b": nrm(lk[5], (1, E), 0.1),
            "w1":   nrm(lk[6], (F, E)),
            "b1":   nrm(lk[7], (1, F)),
            "w2":   nrm(lk[8], (E, F)),
            "b2":   nrm(lk[9], (1, E)),
            "ln2g": gamma(lk[10], (1, E)),
            "ln2b": nrm(lk[11], (1, E), 0.1),
        })
    return params


# ---------------------------------- main ----------------------------------------

if __name__ == "__main__":
    config = dict(
        vocab_size=128,
        context_length=16,
        emb_dim=32,
        n_heads=4,
        n_layers=2,
        drop_rate=0.0,          # dropout = identity
    )
    dim_ff = 2048               # nn.TransformerEncoderLayer default dim_feedforward

    key = jax.random.PRNGKey(0)
    pkey, tkey = jax.random.split(key)
    params = init_params(
        pkey,
        vocab_size=config["vocab_size"],
        context_length=config["context_length"],
        emb_dim=config["emb_dim"],
        n_layers=config["n_layers"],
        dim_ff=dim_ff,
    )

    B, T = 2, 8
    tokens = jax.random.randint(tkey, (B, T), 0, config["vocab_size"], dtype=jnp.int32)

    out = jax.jit(functools.partial(gpt_forward, n_heads=config["n_heads"]))(params, tokens)
    out = jax.block_until_ready(out)

    ref = gpt_forward_ref(params, tokens, config["n_heads"])
    assert out.shape == (B, T, config["vocab_size"]), out.shape
    # bf16 matmul inputs (f32 accumulation / f32 LN & softmax) -> slightly loose tol.
    assert jnp.allclose(out, ref, rtol=2e-2, atol=2e-2), float(jnp.max(jnp.abs(out - ref)))

    print("KERNEL_OK")
</pallas_src>

<mosaic_0001>
module attributes {stable_mosaic.version = 11 : i64} {
  func.func @gpt_layer_kernel(%arg0: i32, %arg1: i32, %arg2: memref<1x8x32xf32, #tpu.memory_space<vmem>>, %arg3: memref<1x4x32x24xbf16, #tpu.memory_space<vmem>>, %arg4: memref<1x4x1x24xf32, #tpu.memory_space<vmem>>, %arg5: memref<1x4x8x32xbf16, #tpu.memory_space<vmem>>, %arg6: memref<1x1x32xf32, #tpu.memory_space<vmem>>, %arg7: memref<1x1x32xf32, #tpu.memory_space<vmem>>, %arg8: memref<1x1x32xf32, #tpu.memory_space<vmem>>, %arg9: memref<1x32x2048xbf16, #tpu.memory_space<vmem>>, %arg10: memref<1x1x2048xf32, #tpu.memory_space<vmem>>, %arg11: memref<1x2048x32xbf16, #tpu.memory_space<vmem>>, %arg12: memref<1x1x32xf32, #tpu.memory_space<vmem>>, %arg13: memref<1x1x32xf32, #tpu.memory_space<vmem>>, %arg14: memref<1x1x32xf32, #tpu.memory_space<vmem>>, %arg15: memref<1x32xf32, #tpu.memory_space<vmem>>, %arg16: memref<1x32xf32, #tpu.memory_space<vmem>>, %arg17: memref<32x128xbf16, #tpu.memory_space<vmem>>, %arg18: memref<1x128xf32, #tpu.memory_space<vmem>>, %arg19: memref<1x8x128xf32, #tpu.memory_space<vmem>>, %arg20: memref<8x32xf32, #tpu.memory_space<vmem>>) attributes {dimension_semantics = [#tpu.dimension_semantics<parallel>, #tpu.dimension_semantics<arbitrary>], iteration_bounds = array<i64: 2, 2>, scalar_prefetch = 0 : i64, scratch_operands = 1 : i64, tpu.core_type = #tpu.core_type<tc>, window_params = [{transform_indices = @transform_0, window_bounds = array<i64: 1, 8, 32>}, {transform_indices = @transform_1, window_bounds = array<i64: 1, 4, 32, 24>}, {transform_indices = @transform_2, window_bounds = array<i64: 1, 4, 1, 24>}, {transform_indices = @transform_3, window_bounds = array<i64: 1, 4, 8, 32>}, {transform_indices = @transform_4, window_bounds = array<i64: 1, 1, 32>}, {transform_indices = @transform_5, window_bounds = array<i64: 1, 1, 32>}, {transform_indices = @transform_6, window_bounds = array<i64: 1, 1, 32>}, {transform_indices = @transform_7, window_bounds = array<i64: 1, 32, 2048>}, {transform_indices = @transform_8, window_bounds = array<i64: 1, 1, 2048>}, {transform_indices = @transform_9, window_bounds = array<i64: 1, 2048, 32>}, {transform_indices = @transform_10, window_bounds = array<i64: 1, 1, 32>}, {transform_indices = @transform_11, window_bounds = array<i64: 1, 1, 32>}, {transform_indices = @transform_12, window_bounds = array<i64: 1, 1, 32>}, {pipeline_mode = #tpu.pipeline_mode<synchronous>, transform_indices = @transform_13, window_bounds = array<i64: 1, 32>}, {pipeline_mode = #tpu.pipeline_mode<synchronous>, transform_indices = @transform_14, window_bounds = array<i64: 1, 32>}, {pipeline_mode = #tpu.pipeline_mode<synchronous>, transform_indices = @transform_15, window_bounds = array<i64: 32, 128>}, {pipeline_mode = #tpu.pipeline_mode<synchronous>, transform_indices = @transform_16, window_bounds = array<i64: 1, 128>}, {transform_indices = @transform_17, window_bounds = array<i64: 1, 8, 128>}]} {
    %c0_i32 = arith.constant 0 : i32
    %0 = arith.cmpi eq, %arg1, %c0_i32 : i32
    %1 = arith.extui %0 : i1 to i32
    %c0_i32_0 = arith.constant 0 : i32
    %2 = arith.cmpi ne, %1, %c0_i32_0 : i32
    scf.if %2 {
      %c0_63 = arith.constant 0 : index
      %c0_64 = arith.constant 0 : index
      %c0_65 = arith.constant 0 : index
      %117 = vector.load %arg2[%c0_63, %c0_64, %c0_65] : memref<1x8x32xf32, #tpu.memory_space<vmem>>, vector<1x8x32xf32>
      %118 = vector.shape_cast %117 : vector<1x8x32xf32> to vector<8x32xf32>
      %c0_66 = arith.constant 0 : index
      %c0_67 = arith.constant 0 : index
      %119 = vector.load %arg20[%c0_66, %c0_67] : memref<8x32xf32, #tpu.memory_space<vmem>>, vector<8x32xf32>
      tpu.vector_store %arg20[%c0_66, %c0_67], %118 {strides = array<i32>} : memref<8x32xf32, #tpu.memory_space<vmem>>, vector<8x32xf32>,
    } else {
    }
    %c0 = arith.constant 0 : index
    %c0_1 = arith.constant 0 : index
    %3 = vector.load %arg20[%c0, %c0_1] : memref<8x32xf32, #tpu.memory_space<vmem>>, vector<8x32xf32>
    %4 = arith.truncf %3 : vector<8x32xf32> to vector<8x32xbf16>
    %5 = vector.shape_cast %4 : vector<8x32xbf16> to vector<1x8x32xbf16>
    %6 = vector.broadcast %5 : vector<1x8x32xbf16> to vector<4x8x32xbf16>
    %c0_2 = arith.constant 0 : index
    %c0_3 = arith.constant 0 : index
    %c0_4 = arith.constant 0 : index
    %c0_5 = arith.constant 0 : index
    %7 = vector.load %arg3[%c0_2, %c0_3, %c0_4, %c0_5] : memref<1x4x32x24xbf16, #tpu.memory_space<vmem>>, vector<1x4x32x24xbf16>
    %8 = vector.shape_cast %7 : vector<1x4x32x24xbf16> to vector<4x32x24xbf16>
    "tpu.trace_start"() <{level = 10 : i32, message = "hte,hef->htf"}> : () -> ()
    %cst = arith.constant dense<0.000000e+00> : vector<4x8x24xf32>
    %9 = tpu.matmul %6, %8, %cst {dimension_numbers = #tpu.dot_dimension_numbers<[2], [1], [1], [2], [0, 0, 0, 1, 1, 2], [0], [0]>} : vector<4x8x32xbf16>, vector<4x32x24xbf16>, vector<4x8x24xf32> -> vector<4x8x24xf32>
    "tpu.trace_stop"() : () -> ()
    %c0_6 = arith.constant 0 : index
    %c0_7 = arith.constant 0 : index
    %c0_8 = arith.constant 0 : index
    %c0_9 = arith.constant 0 : index
    %10 = vector.load %arg4[%c0_6, %c0_7, %c0_8, %c0_9] : memref<1x4x1x24xf32, #tpu.memory_space<vmem>>, vector<1x4x1x24xf32>
    %11 = vector.shape_cast %10 : vector<1x4x1x24xf32> to vector<4x1x24xf32>
    %12 = vector.broadcast %11 : vector<4x1x24xf32> to vector<4x8x24xf32>
    %13 = arith.addf %9, %12 : vector<4x8x24xf32>
    %14 = vector.extract_strided_slice %13 {offsets = [0, 0, 0], sizes = [4, 8, 8], strides = [1, 1, 1]} : vector<4x8x24xf32> to vector<4x8x8xf32>
    %15 = arith.truncf %14 : vector<4x8x8xf32> to vector<4x8x8xbf16>
    %16 = vector.extract_strided_slice %13 {offsets = [0, 0, 8], sizes = [4, 8, 8], strides = [1, 1, 1]} : vector<4x8x24xf32> to vector<4x8x8xf32>
    %17 = arith.truncf %16 : vector<4x8x8xf32> to vector<4x8x8xbf16>
    %18 = vector.extract_strided_slice %13 {offsets = [0, 0, 16], sizes = [4, 8, 8], strides = [1, 1, 1]} : vector<4x8x24xf32> to vector<4x8x8xf32>
    %19 = arith.truncf %18 : vector<4x8x8xf32> to vector<4x8x8xbf16>
    "tpu.trace_start"() <{level = 10 : i32, message = "hqd,hkd->hqk"}> : () -> ()
    %cst_10 = arith.constant dense<0.000000e+00> : vector<4x8x8xf32>
    %20 = tpu.matmul %15, %17, %cst_10 {dimension_numbers = #tpu.dot_dimension_numbers<[2], [2], [1], [1], [0, 0, 0, 1, 1, 1], [0], [0]>} : vector<4x8x8xbf16>, vector<4x8x8xbf16>, vector<4x8x8xf32> -> vector<4x8x8xf32>
    "tpu.trace_stop"() : () -> ()
    %cst_11 = arith.constant dense<0xFF800000> : vector<4x8xf32>
    %21 = vector.multi_reduction <maximumf>, %20, %cst_11 [2] : vector<4x8x8xf32> to vector<4x8xf32>
    %22 = vector.shape_cast %21 : vector<4x8xf32> to vector<4x8x1xf32>
    %23 = vector.broadcast %22 : vector<4x8x1xf32> to vector<4x8x8xf32>
    %24 = arith.subf %20, %23 : vector<4x8x8xf32>
    %25 = math.exp %24 : vector<4x8x8xf32>
    %cst_12 = arith.constant dense<0.000000e+00> : vector<4x8xf32>
    %26 = vector.multi_reduction <add>, %25, %cst_12 [2] : vector<4x8x8xf32> to vector<4x8xf32>
    %27 = vector.shape_cast %26 : vector<4x8xf32> to vector<4x8x1xf32>
    %28 = vector.broadcast %27 : vector<4x8x1xf32> to vector<4x8x8xf32>
    %29 = arith.divf %25, %28 : vector<4x8x8xf32>
    %30 = arith.truncf %29 : vector<4x8x8xf32> to vector<4x8x8xbf16>
    "tpu.trace_start"() <{level = 10 : i32, message = "hqk,hkd->hqd"}> : () -> ()
    %cst_13 = arith.constant dense<0.000000e+00> : vector<4x8x8xf32>
    %31 = tpu.matmul %30, %19, %cst_13 {dimension_numbers = #tpu.dot_dimension_numbers<[2], [1], [1], [2], [0, 0, 0, 1, 1, 2], [0], [0]>} : vector<4x8x8xbf16>, vector<4x8x8xbf16>, vector<4x8x8xf32> -> vector<4x8x8xf32>
    "tpu.trace_stop"() : () -> ()
    %32 = arith.truncf %31 : vector<4x8x8xf32> to vector<4x8x8xbf16>
    %c0_14 = arith.constant 0 : index
    %c0_15 = arith.constant 0 : index
    %c0_16 = arith.constant 0 : index
    %c0_17 = arith.constant 0 : index
    %33 = vector.load %arg5[%c0_14, %c0_15, %c0_16, %c0_17] : memref<1x4x8x32xbf16, #tpu.memory_space<vmem>>, vector<1x4x8x32xbf16>
    %34 = vector.shape_cast %33 : vector<1x4x8x32xbf16> to vector<4x8x32xbf16>
    "tpu.trace_start"() <{level = 10 : i32, message = "hqd,hde->hqe"}> : () -> ()
    %cst_18 = arith.constant dense<0.000000e+00> : vector<4x8x32xf32>
    %35 = tpu.matmul %32, %34, %cst_18 {dimension_numbers = #tpu.dot_dimension_numbers<[2], [1], [1], [2], [0, 0, 0, 1, 1, 2], [0], [0]>} : vector<4x8x8xbf16>, vector<4x8x32xbf16>, vector<4x8x32xf32> -> vector<4x8x32xf32>
    "tpu.trace_stop"() : () -> ()
    %cst_19 = arith.constant dense<0.000000e+00> : vector<8x32xf32>
    %36 = vector.multi_reduction <add>, %35, %cst_19 [0] : vector<4x8x32xf32> to vector<8x32xf32>
    %c0_20 = arith.constant 0 : index
    %c0_21 = arith.constant 0 : index
    %c0_22 = arith.constant 0 : index
    %37 = vector.load %arg6[%c0_20, %c0_21, %c0_22] : memref<1x1x32xf32, #tpu.memory_space<vmem>>, vector<1x1x32xf32>
    %38 = vector.shape_cast %37 : vector<1x1x32xf32> to vector<1x32xf32>
    %39 = vector.broadcast %38 : vector<1x32xf32> to vector<8x32xf32>
    %40 = arith.addf %36, %39 : vector<8x32xf32>
    %41 = arith.addf %3, %40 : vector<8x32xf32>
    %c0_23 = arith.constant 0 : index
    %c0_24 = arith.constant 0 : index
    %c0_25 = arith.constant 0 : index
    %42 = vector.load %arg7[%c0_23, %c0_24, %c0_25] : memref<1x1x32xf32, #tpu.memory_space<vmem>>, vector<1x1x32xf32>
    %43 = vector.shape_cast %42 : vector<1x1x32xf32> to vector<1x32xf32>
    %c0_26 = arith.constant 0 : index
    %c0_27 = arith.constant 0 : index
    %c0_28 = arith.constant 0 : index
    %44 = vector.load %arg8[%c0_26, %c0_27, %c0_28] : memref<1x1x32xf32, #tpu.memory_space<vmem>>, vector<1x1x32xf32>
    %45 = vector.shape_cast %44 : vector<1x1x32xf32> to vector<1x32xf32>
    %cst_29 = arith.constant dense<0.000000e+00> : vector<8xf32>
    %46 = vector.multi_reduction <add>, %41, %cst_29 [1] : vector<8x32xf32> to vector<8xf32>
    %47 = vector.shape_cast %46 : vector<8xf32> to vector<8x1xf32>
    %cst_30 = arith.constant 3.200000e+01 : f32
    %48 = vector.broadcast %cst_30 : f32 to vector<8x1xf32>
    %49 = arith.divf %47, %48 : vector<8x1xf32>
    %50 = vector.broadcast %49 : vector<8x1xf32> to vector<8x32xf32>
    %51 = arith.subf %41, %50 : vector<8x32xf32>
    %52 = arith.mulf %51, %51 : vector<8x32xf32>
    %cst_31 = arith.constant dense<0.000000e+00> : vector<8xf32>
    %53 = vector.multi_reduction <add>, %52, %cst_31 [1] : vector<8x32xf32> to vector<8xf32>
    %54 = vector.shape_cast %53 : vector<8xf32> to vector<8x1xf32>
    %cst_32 = arith.constant 3.200000e+01 : f32
    %55 = vector.broadcast %cst_32 : f32 to vector<8x1xf32>
    %56 = arith.divf %54, %55 : vector<8x1xf32>
    %57 = vector.broadcast %49 : vector<8x1xf32> to vector<8x32xf32>
    %58 = arith.subf %41, %57 : vector<8x32xf32>
    %cst_33 = arith.constant 9.99999974E-6 : f32
    %59 = vector.broadcast %cst_33 : f32 to vector<8x1xf32>
    %60 = arith.addf %56, %59 : vector<8x1xf32>
    %61 = math.rsqrt %60 : vector<8x1xf32>
    %62 = vector.broadcast %61 : vector<8x1xf32> to vector<8x32xf32>
    %63 = arith.mulf %58, %62 : vector<8x32xf32>
    %64 = vector.broadcast %43 : vector<1x32xf32> to vector<8x32xf32>
    %65 = arith.mulf %63, %64 : vector<8x32xf32>
    %66 = vector.broadcast %45 : vector<1x32xf32> to vector<8x32xf32>
    %67 = arith.addf %65, %66 : vector<8x32xf32>
    %68 = arith.truncf %67 : vector<8x32xf32> to vector<8x32xbf16>
    %c0_34 = arith.constant 0 : index
    %c0_35 = arith.constant 0 : index
    %c0_36 = arith.constant 0 : index
    %69 = vector.load %arg9[%c0_34, %c0_35, %c0_36] : memref<1x32x2048xbf16, #tpu.memory_space<vmem>>, vector<1x32x2048xbf16>
    %70 = vector.shape_cast %69 : vector<1x32x2048xbf16> to vector<32x2048xbf16>
    %cst_37 = arith.constant dense<0.000000e+00> : vector<8x2048xf32>
    %71 = tpu.matmul %68, %70, %cst_37 {dimension_numbers = #tpu.dot_dimension_numbers<[1], [0], [0], [1], [0, 0, 1, 1], [], []>} : vector<8x32xbf16>, vector<32x2048xbf16>, vector<8x2048xf32> -> vector<8x2048xf32>
    %c0_38 = arith.constant 0 : index
    %c0_39 = arith.constant 0 : index
    %c0_40 = arith.constant 0 : index
    %72 = vector.load %arg10[%c0_38, %c0_39, %c0_40] : memref<1x1x2048xf32, #tpu.memory_space<vmem>>, vector<1x1x2048xf32>
    %73 = vector.shape_cast %72 : vector<1x1x2048xf32> to vector<1x2048xf32>
    %74 = vector.broadcast %73 : vector<1x2048xf32> to vector<8x2048xf32>
    %75 = arith.addf %71, %74 : vector<8x2048xf32>
    %cst_41 = arith.constant 0.000000e+00 : f32
    %76 = vector.broadcast %cst_41 : f32 to vector<8x2048xf32>
    %77 = arith.maximumf %75, %76 : vector<8x2048xf32>
    %78 = arith.truncf %77 : vector<8x2048xf32> to vector<8x2048xbf16>
    %c0_42 = arith.constant 0 : index
    %c0_43 = arith.constant 0 : index
    %c0_44 = arith.constant 0 : index
    %79 = vector.load %arg11[%c0_42, %c0_43, %c0_44] : memref<1x2048x32xbf16, #tpu.memory_space<vmem>>, vector<1x2048x32xbf16>
    %80 = vector.shape_cast %79 : vector<1x2048x32xbf16> to vector<2048x32xbf16>
    %cst_45 = arith.constant dense<0.000000e+00> : vector<8x32xf32>
    %81 = tpu.matmul %78, %80, %cst_45 {dimension_numbers = #tpu.dot_dimension_numbers<[1], [0], [0], [1], [0, 0, 1, 1], [], []>} : vector<8x2048xbf16>, vector<2048x32xbf16>, vector<8x32xf32> -> vector<8x32xf32>
    %c0_46 = arith.constant 0 : index
    %c0_47 = arith.constant 0 : index
    %c0_48 = arith.constant 0 : index
    %82 = vector.load %arg12[%c0_46, %c0_47, %c0_48] : memref<1x1x32xf32, #tpu.memory_space<vmem>>, vector<1x1x32xf32>
    %83 = vector.shape_cast %82 : vector<1x1x32xf32> to vector<1x32xf32>
    %84 = vector.broadcast %83 : vector<1x32xf32> to vector<8x32xf32>
    %85 = arith.addf %81, %84 : vector<8x32xf32>
    %86 = arith.addf %67, %85 : vector<8x32xf32>
    %c0_49 = arith.constant 0 : index
    %c0_50 = arith.constant 0 : index
    %c0_51 = arith.constant 0 : index
    %87 = vector.load %arg13[%c0_49, %c0_50, %c0_51] : memref<1x1x32xf32, #tpu.memory_space<vmem>>, vector<1x1x32xf32>
    %88 = vector.shape_cast %87 : vector<1x1x32xf32> to vector<1x32xf32>
    %c0_52 = arith.constant 0 : index
    %c0_53 = arith.constant 0 : index
    %c0_54 = arith.constant 0 : index
    %89 = vector.load %arg14[%c0_52, %c0_53, %c0_54] : memref<1x1x32xf32, #tpu.memory_space<vmem>>, vector<1x1x32xf32>
    %90 = vector.shape_cast %89 : vector<1x1x32xf32> to vector<1x32xf32>
    %cst_55 = arith.constant dense<0.000000e+00> : vector<8xf32>
    %91 = vector.multi_reduction <add>, %86, %cst_55 [1] : vector<8x32xf32> to vector<8xf32>
    %92 = vector.shape_cast %91 : vector<8xf32> to vector<8x1xf32>
    %cst_56 = arith.constant 3.200000e+01 : f32
    %93 = vector.broadcast %cst_56 : f32 to vector<8x1xf32>
    %94 = arith.divf %92, %93 : vector<8x1xf32>
    %95 = vector.broadcast %94 : vector<8x1xf32> to vector<8x32xf32>
    %96 = arith.subf %86, %95 : vector<8x32xf32>
    %97 = arith.mulf %96, %96 : vector<8x32xf32>
    %cst_57 = arith.constant dense<0.000000e+00> : vector<8xf32>
    %98 = vector.multi_reduction <add>, %97, %cst_57 [1] : vector<8x32xf32> to vector<8xf32>
    %99 = vector.shape_cast %98 : vector<8xf32> to vector<8x1xf32>
    %cst_58 = arith.constant 3.200000e+01 : f32
    %100 = vector.broadcast %cst_58 : f32 to vector<8x1xf32>
    %101 = arith.divf %99, %100 : vector<8x1xf32>
    %102 = vector.broadcast %94 : vector<8x1xf32> to vector<8x32xf32>
    %103 = arith.subf %86, %102 : vector<8x32xf32>
    %cst_59 = arith.constant 9.99999974E-6 : f32
    %104 = vector.broadcast %cst_59 : f32 to vector<8x1xf32>
    %105 = arith.addf %101, %104 : vector<8x1xf32>
    %106 = math.rsqrt %105 : vector<8x1xf32>
    %107 = vector.broadcast %106 : vector<8x1xf32> to vector<8x32xf32>
    %108 = arith.mulf %103, %107 : vector<8x32xf32>
    %109 = vector.broadcast %88 : vector<1x32xf32> to vector<8x32xf32>
    %110 = arith.mulf %108, %109 : vector<8x32xf32>
    %111 = vector.broadcast %90 : vector<1x32xf32> to vector<8x32xf32>
    %112 = arith.addf %110, %111 : vector<8x32xf32>
    %c0_60 = arith.constant 0 : index
    %c0_61 = arith.constant 0 : index
    %113 = vector.load %arg20[%c0_60, %c0_61] : memref<8x32xf32, #tpu.memory_space<vmem>>, vector<8x32xf32>
    tpu.vector_store %arg20[%c0_60, %c0_61], %112 {strides = array<i32>} : memref<8x32xf32, #tpu.memory_space<vmem>>, vector<8x32xf32>,
    %c1_i32 = arith.constant 1 : i32
    %114 = arith.cmpi eq, %arg1, %c1_i32 : i32
    %115 = arith.extui %114 : i1 to i32
    %c0_i32_62 = arith.constant 0 : i32
    %116 = arith.cmpi ne, %115, %c0_i32_62 : i32
    scf.if %116 {
      %c0_63 = arith.constant 0 : index
      %c0_64 = arith.constant 0 : index
      %117 = vector.load %arg15[%c0_63, %c0_64] : memref<1x32xf32, #tpu.memory_space<vmem>>, vector<1x32xf32>
      %c0_65 = arith.constant 0 : index
      %c0_66 = arith.constant 0 : index
      %118 = vector.load %arg16[%c0_65, %c0_66] : memref<1x32xf32, #tpu.memory_space<vmem>>, vector<1x32xf32>
      %cst_67 = arith.constant dense<0.000000e+00> : vector<8xf32>
      %119 = vector.multi_reduction <add>, %112, %cst_67 [1] : vector<8x32xf32> to vector<8xf32>
      %120 = vector.shape_cast %119 : vector<8xf32> to vector<8x1xf32>
      %cst_68 = arith.constant 3.200000e+01 : f32
      %121 = vector.broadcast %cst_68 : f32 to vector<8x1xf32>
      %122 = arith.divf %120, %121 : vector<8x1xf32>
      %123 = vector.broadcast %122 : vector<8x1xf32> to vector<8x32xf32>
      %124 = arith.subf %112, %123 : vector<8x32xf32>
      %125 = arith.mulf %124, %124 : vector<8x32xf32>
      %cst_69 = arith.constant dense<0.000000e+00> : vector<8xf32>
      %126 = vector.multi_reduction <add>, %125, %cst_69 [1] : vector<8x32xf32> to vector<8xf32>
      %127 = vector.shape_cast %126 : vector<8xf32> to vector<8x1xf32>
      %cst_70 = arith.constant 3.200000e+01 : f32
      %128 = vector.broadcast %cst_70 : f32 to vector<8x1xf32>
      %129 = arith.divf %127, %128 : vector<8x1xf32>
      %130 = vector.broadcast %122 : vector<8x1xf32> to vector<8x32xf32>
      %131 = arith.subf %112, %130 : vector<8x32xf32>
      %cst_71 = arith.constant 9.99999974E-6 : f32
      %132 = vector.broadcast %cst_71 : f32 to vector<8x1xf32>
      %133 = arith.addf %129, %132 : vector<8x1xf32>
      %134 = math.rsqrt %133 : vector<8x1xf32>
      %135 = vector.broadcast %134 : vector<8x1xf32> to vector<8x32xf32>
      %136 = arith.mulf %131, %135 : vector<8x32xf32>
      %137 = vector.broadcast %117 : vector<1x32xf32> to vector<8x32xf32>
      %138 = arith.mulf %136, %137 : vector<8x32xf32>
      %139 = vector.broadcast %118 : vector<1x32xf32> to vector<8x32xf32>
      %140 = arith.addf %138, %139 : vector<8x32xf32>
      %141 = arith.truncf %140 : vector<8x32xf32> to vector<8x32xbf16>
      %c0_72 = arith.constant 0 : index
      %c0_73 = arith.constant 0 : index
      %142 = vector.load %arg17[%c0_72, %c0_73] : memref<32x128xbf16, #tpu.memory_space<vmem>>, vector<32x128xbf16>
      %cst_74 = arith.constant dense<0.000000e+00> : vector<8x128xf32>
      %143 = tpu.matmul %141, %142, %cst_74 {dimension_numbers = #tpu.dot_dimension_numbers<[1], [0], [0], [1], [0, 0, 1, 1], [], []>} : vector<8x32xbf16>, vector<32x128xbf16>, vector<8x128xf32> -> vector<8x128xf32>
      %c0_75 = arith.constant 0 : index
      %c0_76 = arith.constant 0 : index
      %144 = vector.load %arg18[%c0_75, %c0_76] : memref<1x128xf32, #tpu.memory_space<vmem>>, vector<1x128xf32>
      %145 = vector.broadcast %144 : vector<1x128xf32> to vector<8x128xf32>
      %146 = arith.addf %143, %145 : vector<8x128xf32>
      %c0_77 = arith.constant 0 : index
      %c0_78 = arith.constant 0 : index
      %c0_79 = arith.constant 0 : index
      %147 = vector.load %arg19[%c0_77, %c0_78, %c0_79] : memref<1x8x128xf32, #tpu.memory_space<vmem>>, vector<1x8x128xf32>
      %148 = vector.shape_cast %147 : vector<1x8x128xf32> to vector<8x128xf32>
      %149 = vector.shape_cast %146 : vector<8x128xf32> to vector<1x8x128xf32>
      tpu.vector_store %arg19[%c0_77, %c0_78, %c0_79], %149 {strides = array<i32>} : memref<1x8x128xf32, #tpu.memory_space<vmem>>, vector<1x8x128xf32>,
    } else {
    }
    return
  }
  func.func @transform_0(%arg0: i32, %arg1: i32) -> (i32, i32, i32) {
    %c0_i32 = arith.constant 0 : i32
    %c0_i32_0 = arith.constant 0 : i32
    %c0_i32_1 = arith.constant 0 : i32
    return %arg0, %c0_i32, %c0_i32_0 : i32, i32, i32
  }
  func.func @transform_1(%arg0: i32, %arg1: i32) -> (i32, i32, i32, i32) {
    %c0_i32 = arith.constant 0 : i32
    %c0_i32_0 = arith.constant 0 : i32
    %c0_i32_1 = arith.constant 0 : i32
    %c0_i32_2 = arith.constant 0 : i32
    return %arg1, %c0_i32, %c0_i32_0, %c0_i32_1 : i32, i32, i32, i32
  }
  func.func @transform_2(%arg0: i32, %arg1: i32) -> (i32, i32, i32, i32) {
    %c0_i32 = arith.constant 0 : i32
    %c0_i32_0 = arith.constant 0 : i32
    %c0_i32_1 = arith.constant 0 : i32
    %c0_i32_2 = arith.constant 0 : i32
    return %arg1, %c0_i32, %c0_i32_0, %c0_i32_1 : i32, i32, i32, i32
  }
  func.func @transform_3(%arg0: i32, %arg1: i32) -> (i32, i32, i32, i32) {
    %c0_i32 = arith.constant 0 : i32
    %c0_i32_0 = arith.constant 0 : i32
    %c0_i32_1 = arith.constant 0 : i32
    %c0_i32_2 = arith.constant 0 : i32
    return %arg1, %c0_i32, %c0_i32_0, %c0_i32_1 : i32, i32, i32, i32
  }
  func.func @transform_4(%arg0: i32, %arg1: i32) -> (i32, i32, i32) {
    %c0_i32 = arith.constant 0 : i32
    %c0_i32_0 = arith.constant 0 : i32
    %c0_i32_1 = arith.constant 0 : i32
    return %arg1, %c0_i32, %c0_i32_0 : i32, i32, i32
  }
  func.func @transform_5(%arg0: i32, %arg1: i32) -> (i32, i32, i32) {
    %c0_i32 = arith.constant 0 : i32
    %c0_i32_0 = arith.constant 0 : i32
    %c0_i32_1 = arith.constant 0 : i32
    return %arg1, %c0_i32, %c0_i32_0 : i32, i32, i32
  }
  func.func @transform_6(%arg0: i32, %arg1: i32) -> (i32, i32, i32) {
    %c0_i32 = arith.constant 0 : i32
    %c0_i32_0 = arith.constant 0 : i32
    %c0_i32_1 = arith.constant 0 : i32
    return %arg1, %c0_i32, %c0_i32_0 : i32, i32, i32
  }
  func.func @transform_7(%arg0: i32, %arg1: i32) -> (i32, i32, i32) {
    %c0_i32 = arith.constant 0 : i32
    %c0_i32_0 = arith.constant 0 : i32
    %c0_i32_1 = arith.constant 0 : i32
    return %arg1, %c0_i32, %c0_i32_0 : i32, i32, i32
  }
  func.func @transform_8(%arg0: i32, %arg1: i32) -> (i32, i32, i32) {
    %c0_i32 = arith.constant 0 : i32
    %c0_i32_0 = arith.constant 0 : i32
    %c0_i32_1 = arith.constant 0 : i32
    return %arg1, %c0_i32, %c0_i32_0 : i32, i32, i32
  }
  func.func @transform_9(%arg0: i32, %arg1: i32) -> (i32, i32, i32) {
    %c0_i32 = arith.constant 0 : i32
    %c0_i32_0 = arith.constant 0 : i32
    %c0_i32_1 = arith.constant 0 : i32
    return %arg1, %c0_i32, %c0_i32_0 : i32, i32, i32
  }
  func.func @transform_10(%arg0: i32, %arg1: i32) -> (i32, i32, i32) {
    %c0_i32 = arith.constant 0 : i32
    %c0_i32_0 = arith.constant 0 : i32
    %c0_i32_1 = arith.constant 0 : i32
    return %arg1, %c0_i32, %c0_i32_0 : i32, i32, i32
  }
  func.func @transform_11(%arg0: i32, %arg1: i32) -> (i32, i32, i32) {
    %c0_i32 = arith.constant 0 : i32
    %c0_i32_0 = arith.constant 0 : i32
    %c0_i32_1 = arith.constant 0 : i32
    return %arg1, %c0_i32, %c0_i32_0 : i32, i32, i32
  }
  func.func @transform_12(%arg0: i32, %arg1: i32) -> (i32, i32, i32) {
    %c0_i32 = arith.constant 0 : i32
    %c0_i32_0 = arith.constant 0 : i32
    %c0_i32_1 = arith.constant 0 : i32
    return %arg1, %c0_i32, %c0_i32_0 : i32, i32, i32
  }
  func.func @transform_13(%arg0: i32, %arg1: i32) -> (i32, i32) {
    %c0_i32 = arith.constant 0 : i32
    %c0_i32_0 = arith.constant 0 : i32
    %c0_i32_1 = arith.constant 0 : i32
    return %c0_i32, %c0_i32_0 : i32, i32
  }
  func.func @transform_14(%arg0: i32, %arg1: i32) -> (i32, i32) {
    %c0_i32 = arith.constant 0 : i32
    %c0_i32_0 = arith.constant 0 : i32
    %c0_i32_1 = arith.constant 0 : i32
    return %c0_i32, %c0_i32_0 : i32, i32
  }
  func.func @transform_15(%arg0: i32, %arg1: i32) -> (i32, i32) {
    %c0_i32 = arith.constant 0 : i32
    %c0_i32_0 = arith.constant 0 : i32
    %c0_i32_1 = arith.constant 0 : i32
    return %c0_i32, %c0_i32_0 : i32, i32
  }
  func.func @transform_16(%arg0: i32, %arg1: i32) -> (i32, i32) {
    %c0_i32 = arith.constant 0 : i32
    %c0_i32_0 = arith.constant 0 : i32
    %c0_i32_1 = arith.constant 0 : i32
    return %c0_i32, %c0_i32_0 : i32, i32
  }
  func.func @transform_17(%arg0: i32, %arg1: i32) -> (i32, i32, i32) {
    %c0_i32 = arith.constant 0 : i32
    %c0_i32_0 = arith.constant 0 : i32
    %c0_i32_1 = arith.constant 0 : i32
    return %arg0, %c0_i32, %c0_i32_0 : i32, i32, i32
  }
}

</mosaic_0001>

<bundles_post_ra>
// kernel: gpt_forward.1
= control target key start
LH: loop header
LB: loop body
LE: loop exit
PB: predicated region body
PF: predicated region fallthrough
CT: control target
= control target key end

     0   :  { %s5153_s0 = inlined_call_operand.vmem [shape: f32[2,8,32], index: 0, kind: input, shape index: {}]   ;;  %s5154_s1 = inlined_call_operand.vmem [shape: bf16[2,4,32,24], index: 1, kind: input, shape index: {}]   ;;  %s5155_s2 = inlined_call_operand.vmem [shape: f32[2,4,1,24], index: 2, kind: input, shape index: {}]   ;;  %s5156_s3 = inlined_call_operand.vmem [shape: bf16[2,4,8,32], index: 3, kind: input, shape index: {}]   ;;  %s5157_s4 = inlined_call_operand.vmem [shape: f32[2,1,32], index: 4, kind: input, shape index: {}]   ;;  %s5158_s5 = inlined_call_operand.vmem [shape: f32[2,1,32], index: 5, kind: input, shape index: {}]   ;;  %s5159_s6 = inlined_call_operand.vmem [shape: f32[2,1,32], index: 6, kind: input, shape index: {}]   ;;  %s5160_s7 = inlined_call_operand.vmem [shape: bf16[2,32,2048], index: 7, kind: input, shape index: {}]   ;;  %s5161_s8 = inlined_call_operand.vmem [shape: f32[2,1,2048], index: 8, kind: input, shape index: {}]   ;;  %s5162_s9 = inlined_call_operand.vmem [shape: bf16[2,2048,32], index: 9, kind: input, shape index: {}]   ;;  %s5163_s10 = inlined_call_operand.vmem [shape: f32[2,1,32], index: 10, kind: input, shape index: {}]   ;;  %s5164_s11 = inlined_call_operand.vmem [shape: f32[2,1,32], index: 11, kind: input, shape index: {}]   ;;  %s5165_s12 = inlined_call_operand.vmem [shape: f32[2,1,32], index: 12, kind: input, shape index: {}]   ;;  %s5166_s13 = inlined_call_operand.vmem [shape: f32[1,32], index: 13, kind: input, shape index: {}]   ;;  %s5167_s14 = inlined_call_operand.vmem [shape: f32[1,32], index: 14, kind: input, shape index: {}]   ;;  %s5168_s15 = inlined_call_operand.vmem [shape: bf16[32,128], index: 15, kind: input, shape index: {}]   ;;  %s5169_s16 = inlined_call_operand.vmem [shape: f32[1,128], index: 16, kind: input, shape index: {}]   ;;  %s5170_s17 = inlined_call_operand.hbm [shape: f32[2,8,128], index: 17, kind: output, shape index: {}]  }
   0x1   :  { %5188 = sst [smem:[#allocation20_spill]] %s5153_s0 }
   0x2   :  { %5189 = sst [smem:[#allocation21_spill]] %s5154_s1 }
   0x3   :  { %5190 = sst [smem:[#allocation22_spill]] %s5155_s2 }
   0x4   :  { %5191 = sst [smem:[#allocation23_spill]] %s5156_s3 }
   0x5   :  { %5192 = sst [smem:[#allocation24_spill]] %s5166_s13 }
   0x6   :  { %5193 = sst [smem:[#allocation25_spill]] %s5167_s14 }
   0x7   :  { %5194 = sst [smem:[#allocation26_spill]] %s5168_s15 }
   0x8   :  { %5195 = sst [smem:[#allocation27_spill]] %s5169_s16 }
   0x9   :  { %5196 = sst [smem:[#allocation28_spill]] %s5170_s17 }
   0xa   :  { %22 = vsyncpa [#allocation4], 0 }
   0xb   :  { %24 = vsyncpa [#allocation4 + $0x1], 0  ;;  %s4560_s24 = smov 0   ;;  %s4562_s25 = smov 0  }
   0xc   :  { %s4564_s26 = smov 0   ;;  %s4566_s27 = smov 0  }
   0xd   :  { %s4568_s28 = smov 0   ;;  %s4570_s29 = smov 0  }
   0xe   :  { %s4572_s0 = smov 0   ;;  %s4574_s30 = smov 0  }
   0xf LB: > { %5197 = sst [smem:[#allocation6_spill]] %s4437_s24  ;;  %s3350_s18 = sadd.s32 4294967295, %s4465_s30   ;;  %s4465_s30 = sphi %s4574_s30, %s30_s30   ;;  %s4461_s0 = sphi %s4572_s0, %s5241_s0   ;;  %s4457_s29 = sphi %s4570_s29, %s5240_s29   ;;  %s4453_s28 = sphi %s4568_s28, %s5239_s28   ;;  %s4449_s27 = sphi %s4566_s27, %s5238_s27   ;;  %s4445_s26 = sphi %s4564_s26, %s5237_s26   ;;  %s4441_s25 = sphi %s4562_s25, %s5236_s25   ;;  %s4437_s24 = sphi %s4560_s24, %s5235_s24  }
  0x10   : > { %5198 = sst [smem:[#allocation7_spill]] %s4441_s25  ;;  %s3351_s19 = sadd.s32 4294967294, %s4465_s30  }
  0x11   : > { %5199 = sst [smem:[#allocation8_spill]] %s4445_s26  ;;  %s39_s1 = sadd.s32 1, %s4457_s29 }
  0x12   : > { %5200 = sst [smem:[#allocation9_spill]] %s4453_s28  ;;  %p40_p0 = scmp.ge.s32.totalorder %s39_s1, 2 }
  0x13   : > { %5201 = sst [smem:[#allocation10_spill]] %s4457_s29  ;;  %s42_s20 = sadd.s32 1, %s4461_s0 }
  0x14   : > { %5202 = sst [smem:[#allocation11_spill]] %s4461_s0  ;;  %p481_p1 = scmp.ne.s32.totalorder %s4445_s26, %s4441_s25 }
  0x15   : > { %5203 = sst [smem:[#allocation12_spill]] %s4465_s30  ;;  %p482_p2 = scmp.eq.s32.totalorder %s3350_s18, 3 }
  0x16   : > { %s5243_s1 = smov (%p40_p0, %s39_s1), 0  ;;  %s5245_s20 = smov (!%p40_p0, %s42_s20), %s4461_s0 }
  0x17   : > { %5204 = sst [smem:[#allocation13_spill]] %s5243_s1  ;;  %p4609_p3 = por %p482_p2, %p481_p1 }
  0x18   : > { %p487_p4 = scmp.ne.s32.totalorder %s4441_s25, %s4437_s24  ;;  %p44_p5 = scmp.ge.s32.totalorder %s5245_s20, 2 }
  0x19   : > { %s5205_s21 = scalar_select %p4609_p3, 1, 0 }
  0x1a   : > { %p488_p6 = scmp.eq.s32.totalorder %s3351_s19, 3  ;;  %p3354_p7 = scmp.ge.s32.totalorder %s4465_s30, 1 }
  0x1b   : > { %5206 = sst [smem:[#allocation14_spill]] %s5205_s21  ;;  %p607_p8 = scmp.lt.s32.totalorder %s4465_s30, 5 }
  0x1c   : > { %s5247_s20 = smov (%p44_p5, %s5245_s20), 0  ;;  %p4619_p9 = por %p488_p6, %p487_p4 }
  0x1d   : > { %5207 = sst [smem:[#allocation15_spill]] %s5247_s20  ;;  %p608_p10 = pnand %p3354_p7, %p607_p8 }
  0x1e   : > { %s5208_s22 = scalar_select %p4619_p9, 1, 0 }
  0x1f   : > { %s468_s23 = ssub.s32 %s4461_s0, %s5247_s20  ;;  %s471_s18 = sadd.s32 1, %s4445_s26 }
  0x20   : > { %5209 = sst [smem:[#allocation16_spill]] %s5208_s22  ;;  %p469_p11 = scmp.eq.s32.totalorder %s468_s23, 0 }
  0x21   : > { %611 = sbr.rel (%p608_p10) target bundleno = 2328 (0x918), region = 88 }
  0x22   : > { %s4627_s1 = scalar_select %p469_p11, %s4445_s26, %s471_s18  }
  0x24   : > { %5210 = sst [smem:[#allocation17_spill]] %s4627_s1 }
  0x26   : > { %s5176_s19 = sand.u32 1, %s4441_s25   ;;  %p704_p12 = scmp.lt.s32.totalorder %s4453_s28, 1 }
  0x27   : > { %s4633_s29 = sshll.u32 %s5176_s19, 3  ;;  %p708_p13 = scmp.lt.s32.totalorder %s4449_s27, 1 }
  0x28   : > { %s705_s22 = scalar_select %p704_p12, %s4453_s28, 1 }
  0x29   : > { %s4638_s24 = scalar_select %p708_p13, %s4449_s27, 1 }
  0x2a   : > { %s3356_s23 = sshll.u32 %s705_s22, 3  ;;  %s5211_s0 = sld [smem:[#allocation20_spill]] }
  0x2b   : > { %s4086_s19 = sshll.u32 %s4638_s24, 6  ;;  %s5212_s17 = sld [smem:[#allocation21_spill]] }
  0x2c   : > { %s3359_s25 = sshll.u32 %s4638_s24, 2  ;;  %s5214_s2 = sld [smem:[#allocation22_spill]] }
  0x2d   : > { %s4087_s22 = sshll.u32 %s4638_s24, 4  ;;  %s5216_s3 = sld [smem:[#allocation23_spill]] }
  0x2e   : > { %s753_s13 = scalar_lea.vmem %s5165_s12, %s4638_s24  ;;  %p3367_p0 = scmp.ne.s32.totalorder %s4449_s27, 0 }
  0x30   : > { %s707_s1 = scalar_lea.vmem %s5211_s0, %s3356_s23  ;;  %s4089_s23 = sshll.u32 %s4638_s24, 10 }
  0x31   : > { %s4647_s21 = scalar_lea.vmem %s5212_s17, %s4086_s19  ;;  %s4688_s30 = scalar_lea.vmem %s5162_s9, %s4089_s23 }
  0x32   : > { %5213 = sst [smem:[#allocation18_spill]] %s4647_s21  ;;  %s4653_s14 = scalar_lea.vmem %s5214_s2, %s3359_s25 }
  0x33   : > { %5215 = sst [smem:[#allocation19_spill]] %s4653_s14  ;;  %s4659_s0 = scalar_lea.vmem %s5216_s3, %s4087_s22 }
  0x34   : > { %s4088_s25 = sshll.u32 %s4638_s24, 8  ;;  %s4677_s14 = scalar_lea.vmem %s5161_s8, %s4087_s22 }
  0x35   : > { %s4682_s3 = scalar_lea.vmem %s5160_s7, %s4088_s25  ;;  %s747_s21 = scalar_lea.vmem %s5163_s10, %s4638_s24 }
  0x36   : > { %s750_s2 = scalar_lea.vmem %s5164_s11, %s4638_s24  ;;  %s703_s25 = scalar_lea.vmem [#allocation3], %s4633_s29 }
  0x37   : > { %758 = sbr.rel (%p3367_p0) target bundleno = 62 (0x3e), region = 92 }
  0x3c   : > { %v759_v0 = vld [vmem:[%s707_s1] sm:$0xff]  ;;  %vm760_vm0 = vcmask 261120  }
  0x3d   : > { %761 = vst.msk [vmem:[#allocation2] sm:$0xff] %vm760_vm0, %v759_v0 }
  0x3e PF: > { %s5217_s26 = sld [smem:[#allocation18_spill]]  ;;  %vm808_vm1 = vcmask 261120   ;;  %s4467_s19 = smov 120   ;;  %vm909_vm2 = vcmask 64512   ;;  %vm1106_vm3 = vcmask 1043456  }
  0x3f   : > { %s5218_s1 = sld [smem:[#allocation19_spill]]  ;;  %s4468_s16 = smov 112  }
  0x40   : > { %s5219_s23 = scalar_lea.vmem %s5157_s4, %s4638_s24  ;;  %s5220_s15 = scalar_lea.vmem %s5158_s5, %s4638_s24 }
  0x41   : > { %p4072_p1 = scmp.ne.s32.totalorder %s4449_s27, 1 }
  0x44   : > { %v4091_v1 = vld [vmem:[%s5217_s26 + $0x8] sm:$0xff]  ;;  %v4093_v2 = vld [vmem:[%s5217_s26 + $0x18] sm:$0xff]  ;;  %v4090_v4 = vld [vmem:[%s5217_s26] sm:$0xff] }
  0x45   : > { %v4095_v3 = vld [vmem:[%s5217_s26 + $0x28] sm:$0xff]  ;;  %v4092_v5 = vld [vmem:[%s5217_s26 + $0x10] sm:$0xff]  ;;  %818 = vmatpush.bf16.msra.mxu0 %v4091_v1  ;;  %843 = vmatpush.bf16.msra.mxu1 %v4093_v2  ;;  %v4094_v6 = vld [vmem:[%s5217_s26 + $0x20] sm:$0xff] }
  0x46   : > { %v4097_v7 = vld [vmem:[%s5217_s26 + $0x38] sm:$0xff]  ;;  %v4711_v8 = vld [vmem:[#allocation2] sm:$0xff]  ;;  %868 = vmatpush.bf16.msra.mxu2 %v4095_v3  ;;  %v4096_v9 = vld [vmem:[%s5217_s26 + $0x30] sm:$0xff]  ;;  %s5221_s26 = scalar_lea.vmem %s5159_s6, %s4638_s24 }
  0x47   : > { %893 = vmatpush.bf16.msra.mxu3 %v4097_v7  ;;  %v763_v10 = vpack.c.bf16 %v4711_v8, %v4711_v8  ;;  %v4334_v11 = vld [vmem:[%s5218_s1] ss:$0 sm:$0xff]  ;;  %v4335_v12 = vld [vmem:[%s5218_s1 + $0x1] ss:$0 sm:$0xff]  ;;  %v4336_v18 = vld [vmem:[%s5218_s1 + $0x2] ss:$0 sm:$0xff] }
  0x48   : > { %v4337_v21 = vld [vmem:[%s5218_s1 + $0x3] ss:$0 sm:$0xff] }
  0x49   : > { %819 = vmatpush.bf16.msra.mxu0 %v4090_v4  ;;  %844 = vmatpush.bf16.msra.mxu1 %v4092_v5 }
  0x4a   : > { %869 = vmatpush.bf16.msra.mxu2 %v4094_v6 }
  0x4b   : > { %894 = vmatpush.bf16.msra.mxu3 %v4096_v9 }
  0x4c   : > { %3376 = vmatmul.msk.bf16.vlgmr.msra.gmra.mxu0 %vm808_vm1, %v763_v10  ;;  %3385 = vmatmul.msk.bf16.vlgmr.msra.gmra.mxu1 %vm808_vm1, %v763_v10 }
  0x4d   : > { %3394 = vmatmul.msk.bf16.vlgmr.msra.gmra.mxu2 %vm808_vm1, %v763_v10 }
  0x4e   : > { %3403 = vmatmul.msk.bf16.vlgmr.msra.gmra.mxu3 %vm808_vm1, %v763_v10 }
  0xc9   : > { %v821_v13 = vpop.f32.mrf.mxu0  ;;  %v846_v14 = vpop.f32.mrf.mxu1 }
  0xca   : > { %v822_v15 = vadd.f32 %v4334_v11, %v821_v13  ;;  %v847_v16 = vadd.f32 %v4335_v12, %v846_v14 }
  0xcc   : > { %v900_v17 = vpack.c.bf16 %v822_v15, %v822_v15  ;;  %v901_v19 = vpack.c.bf16 %v847_v16, %v847_v16 }
  0xce   : > { %v905_v20 = vunpack.c.l.b16 %v900_v17  ;;  %v930_v27 = vunpack.c.l.b16 %v901_v19 }
  0xd0   : > { %v871_v22 = vpop.f32.mrf.mxu2  ;;  %v906_v23 = vpack.c.b16 %v905_v20, %v905_v20  ;;  %v4724_v33 = vpack.c.b16 %v930_v27, %v930_v27 }
  0xd1   : > { %v872_v24 = vadd.f32 %v4336_v18, %v871_v22  ;;  %v823_v25 = vpop.f32.mrf.mxu0  ;;  %v848_v26 = vpop.f32.mrf.mxu1 }
  0xd2   : > { %907 = vrot.lane.b32.xlu1 %v906_v23, %s4467_s19  ;;  %v896_v28 = vpop.f32.mrf.mxu3 }
  0xd3   : > { %v902_v29 = vpack.c.bf16 %v872_v24, %v872_v24  ;;  %v897_v30 = vadd.f32 %v4337_v21, %v896_v28 }
  0xd5   : > { %v903_v31 = vpack.c.bf16 %v897_v30, %v897_v30  ;;  %v954_v32 = vunpack.c.l.b16 %v902_v29 }
  0xd7   : > { %v955_v34 = vpack.c.b16 %v954_v32, %v954_v32  ;;  %v978_v36 = vunpack.c.l.b16 %v903_v31 }
  0xd8   : > { %v873_v35 = vpop.f32.mrf.mxu2 }
  0xd9   : > { %956 = vrot.lane.b32.xlu0 %v955_v34, %s4467_s19  ;;  %v979_v38 = vpack.c.b16 %v978_v36, %v978_v36 }
  0xda   : > { %932 = vrot.lane.b32.xlu1 %v4724_v33, %s4467_s19  ;;  %v898_v37 = vpop.f32.mrf.mxu3 }
  0xe1   : > { %980 = vrot.lane.b32.xlu0 %v979_v38, %s4467_s19 }
 0x144   : > { %v908_v39 = vpop.permute.xlu1 %907 }
 0x145   : > { %v914_v40 = vsel %vm909_vm2, %v908_v39, 0 }
 0x146   : > { %923 = vmatpush.bf16.xpose.msrb.mxu0 %v914_v40 }
 0x14b   : > { %v957_v41 = vpop.permute.xlu0 %956 }
 0x14c   : > { %v962_v42 = vsel %vm909_vm2, %v957_v41, 0  ;;  %v933_v43 = vpop.permute.xlu1 %932 }
 0x14d   : > { %971 = vmatpush.bf16.xpose.msrb.mxu2 %v962_v42  ;;  %3404 = vmatmul.msk.bf16.vlgmr.msrb.gmra.mxu0 %vm909_vm2, %v900_v17  ;;  %v938_v44 = vsel %vm909_vm2, %v933_v43, 0 }
 0x14e   : > { %947 = vmatpush.bf16.xpose.msrb.mxu1 %v938_v44 }
 0x153   : > { %v981_v45 = vpop.permute.xlu0 %980 }
 0x154   : > { %3406 = vmatmul.msk.bf16.vlgmr.msrb.gmra.mxu2 %vm909_vm2, %v902_v29  ;;  %v986_v46 = vsel %vm909_vm2, %v981_v45, 0 }
 0x155   : > { %995 = vmatpush.bf16.xpose.msrb.mxu3 %v986_v46  ;;  %3405 = vmatmul.msk.bf16.vlgmr.msrb.gmra.mxu1 %vm909_vm2, %v901_v19 }
 0x15c   : > { %3407 = vmatmul.msk.bf16.vlgmr.msrb.gmra.mxu3 %vm909_vm2, %v903_v31 }
 0x1ca   : > { %v925_v47 = vpop.f32.mrf.mxu0 }
 0x1cb   : > { %v1001_v48 = vsel %vm909_vm2, %v925_v47, -inf }
 0x1cc   : > { %1002 = vmax.xlane.f32.xlu0 %v1001_v48 }
 0x1d2   : > { %v927_v49 = vpop.f32.mrf.mxu0  ;;  %v949_v50 = vpop.f32.mrf.mxu1 }
 0x1d3   : > { %v1004_v51 = vsel %vm909_vm2, %v949_v50, -inf }
 0x1d4   : > { %1005 = vmax.xlane.f32.xlu1 %v1004_v51 }
 0x1d7   : > { %v973_v52 = vpop.f32.mrf.mxu2 }
 0x1d8   : > { %v1007_v53 = vsel %vm909_vm2, %v973_v52, -inf }
 0x1d9   : > { %1008 = vmax.xlane.f32.xlu2 %v1007_v53 }
 0x1da   : > { %v951_v54 = vpop.f32.mrf.mxu1 }
 0x1df   : > { %v975_v55 = vpop.f32.mrf.mxu2  ;;  %v997_v56 = vpop.f32.mrf.mxu3 }
 0x1e0   : > { %v1010_v57 = vsel %vm909_vm2, %v997_v56, -inf  ;;  %1165 = vrot.lane.b32.xlu0 %v979_v38, %s4468_s16 }
 0x1e1   : > { %1011 = vmax.xlane.f32.xlu2 %v1010_v57 }
 0x1e7   : > { %v999_v58 = vpop.f32.mrf.mxu3 }
 0x1ed   : > { %1101 = vrot.lane.b32.xlu1 %v906_v23, %s4468_s16 }
 0x1f9   : > { %1144 = vrot.lane.b32.xlu2 %v955_v34, %s4468_s16 }
 0x23f   : > { %v1003_v59 = vpop.xlane.xlu0 %1002 }
 0x240   : > { %v1013_v60 = vsub.f32 %v925_v47, %v1003_v59 }
 0x242   : > { %v1017_v61 = vmul.f32 1.442695, %v1013_v60 }
 0x244   : > { %4344 = vpow2.f32 %v1017_v61 }
 0x247   : > { %v1006_v62 = vpop.xlane.xlu1 %1005 }
 0x248   : > { %v1014_v63 = vsub.f32 %v949_v50, %v1006_v62 }
 0x24a   : > { %v4345_v0 = vpop.eup %4344  ;;  %v1019_v1 = vmul.f32 1.442695, %v1014_v63 }
 0x24b   : > { %v1025_v2 = vsel %vm909_vm2, %v4345_v0, 0.0 }
 0x24c   : > { %4346 = vpow2.f32 %v1019_v1  ;;  %v1009_v3 = vpop.xlane.xlu2 %1008  ;;  %1026 = vadd.xlane.f32.xlu2 %v1025_v2 }
 0x24d   : > { %v1015_v4 = vsub.f32 %v973_v52, %v1009_v3 }
 0x24f   : > { %v1021_v5 = vmul.f32 1.442695, %v1015_v4 }
 0x251   : > { %4348 = vpow2.f32 %v1021_v5 }
 0x252   : > { %v4743_v6 = vpop.eup %4346  ;;  %v1166_v7 = vpop.permute.xlu0 %1165 }
 0x253   : > { %v1171_v9 = vsel %vm1106_vm3, %v1166_v7, 0  ;;  %v1028_v10 = vsel %vm909_vm2, %v4743_v6, 0.0 }
 0x254   : > { %v1012_v11 = vpop.xlane.xlu2 %1011  ;;  %1180 = vmatpush.bf16.msra.mxu3 %v1171_v9  ;;  %1029 = vadd.xlane.f32.xlu2 %v1028_v10 }
 0x255   : > { %v1016_v12 = vsub.f32 %v997_v56, %v1012_v11 }
 0x257   : > { %v1023_v13 = vmul.f32 1.442695, %v1016_v12  ;;  %v4748_v14 = vpop.eup %4348 }
 0x258   : > { %v1031_v15 = vsel %vm909_vm2, %v4748_v14, 0.0 }
 0x259   : > { %4350 = vpow2.f32 %v1023_v13  ;;  %v1190_v13 = vld [vmem:[%s4659_s0] sm:$0xf] }
 0x25c   : > { %v1145_v16 = vpop.permute.xlu2 %1144  ;;  %1032 = vadd.xlane.f32.xlu2 %v1031_v15  ;;  %v1191_v15 = vld [vmem:[%s4659_s0 + $0x4] sm:$0xf] }
 0x25d   : > { %v1150_v17 = vsel %vm1106_vm3, %v1145_v16, 0  ;;  %v1217_v16 = vsel %vm1106_vm3, %v1191_v15, 0 }
 0x25e   : > { %1159 = vmatpush.bf16.msra.mxu2 %v1150_v17  ;;  %v1192_v17 = vld [vmem:[%s4659_s0 + $0x8] sm:$0xf] }
 0x25f   : > { %v1102_v18 = vpop.permute.xlu1 %1101  ;;  %v4753_v19 = vpop.eup %4350 }
 0x260   : > { %v1108_v20 = vsel %vm1106_vm3, %v1102_v18, 0  ;;  %v1034_v21 = vsel %vm909_vm2, %v4753_v19, 0.0  ;;  %v1236_v18 = vsel %vm1106_vm3, %v1192_v17, 0  ;;  %v3426_v17 = vld [vmem:[%s4682_s3 + $0x8] sm:$0xf] }
 0x261   : > { %1117 = vmatpush.bf16.msra.mxu0 %v1108_v20  ;;  %v1193_v20 = vld [vmem:[%s4659_s0 + $0xc] sm:$0xf] }
 0x262   : > { %1245 = vmatpush.bf16.msrb.mxu2 %v1236_v18  ;;  %v4107_v18 = vld [vmem:[%s4682_s3 + $0x44] sm:$0xf0] }
 0x264   : > { %1035 = vadd.xlane.f32.xlu2 %v1034_v21  ;;  %v1255_v21 = vsel %vm1106_vm3, %v1193_v20, 0 }
 0x265   : > { %1264 = vmatpush.bf16.msrb.mxu3 %v1255_v21  ;;  %v3427_v21 = vor.u32 %v4107_v18, %v3426_v17  ;;  %v3458_v17 = vld [vmem:[%s4682_s3 + $0x28] sm:$0xf] }
 0x266   : > { %v4111_v18 = vld [vmem:[%s4682_s3 + $0x64] sm:$0xf0] }
 0x27c   : > { %1123 = vrot.lane.b32.xlu2 %v4724_v33, %s4468_s16 }
 0x2bf   : > { %v1027_v22 = vpop.xlane.xlu2 %1026 }
 0x2c0   : > { %4352 = vrcp.f32 %v1027_v22  ;;  %v1048_v27 = vand.u32 2147483648, %v1027_v22  ;;  %v1046_v29 = vand.u32 2147483647, %v1027_v22  ;;  %vm1042_vm5 = vweird.f32 %v1027_v22 }
 0x2c2   : > { %v1049_v32 = vor.u32 1.1754944e-38, %v1048_v27  ;;  %vm1047_vm7 = vcmp.eq.f32.partialorder %v1046_v29, 8.507059e+37 }
 0x2c6   : > { %v4353_v23 = vpop.eup %4352 }
 0x2c7   : > { %v1038_v24 = vmul.f32 %v4353_v23, %v1027_v22  ;;  %v1030_v25 = vpop.xlane.xlu2 %1029  ;;  %vm1043_vm4 = vweird.f32 %v4353_v23 }
 0x2c8   : > { %4354 = vrcp.f32 %v1030_v25  ;;  %vm1044_vm6 = vmor %vm1042_vm5, %vm1043_vm4  ;;  %v1063_v42 = vand.u32 2147483648, %v1030_v25  ;;  %vm1057_vm9 = vweird.f32 %v1030_v25  ;;  %v1061_v44 = vand.u32 2147483647, %v1030_v25 }
 0x2c9   : > { %v1039_v26 = vsub.f32 1.0, %v1038_v24 }
 0x2ca   : > { %v1064_v48 = vor.u32 1.1754944e-38, %v1063_v42  ;;  %vm1062_vm11 = vcmp.eq.f32.partialorder %v1061_v44, 8.507059e+37 }
 0x2cb   : > { %v1040_v28 = vmul.f32 %v4353_v23, %v1039_v26 }
 0x2cd   : > { %v1041_v30 = vadd.f32 %v4353_v23, %v1040_v28 }
 0x2ce   : > { %v4355_v31 = vpop.eup %4354 }
 0x2cf   : > { %v1045_v34 = vsel %vm1044_vm6, %v4353_v23, %v1041_v30  ;;  %v1053_v35 = vmul.f32 %v4355_v31, %v1030_v25  ;;  %v1033_v33 = vpop.xlane.xlu2 %1032  ;;  %vm1058_vm8 = vweird.f32 %v4355_v31 }
 0x2d0   : > { %v1050_v36 = vsel %vm1047_vm7, %v1049_v32, %v1045_v34  ;;  %4356 = vrcp.f32 %v1033_v33  ;;  %vm1059_vm10 = vmor %vm1057_vm9, %vm1058_vm8  ;;  %v1078_v50 = vand.u32 2147483648, %v1033_v33  ;;  %v1076_v53 = vand.u32 2147483647, %v1033_v33 }
 0x2d1   : > { %v1051_v37 = vmul.f32 %v4345_v0, %v1050_v36  ;;  %v1054_v38 = vsub.f32 1.0, %v1053_v35  ;;  %vm1072_vm13 = vweird.f32 %v1033_v33 }
 0x2d2   : > { %v1079_v57 = vor.u32 1.1754944e-38, %v1078_v50  ;;  %vm1077_vm15 = vcmp.eq.f32.partialorder %v1076_v53, 8.507059e+37 }
 0x2d3   : > { %v1055_v39 = vmul.f32 %v4355_v31, %v1054_v38  ;;  %v1097_v40 = vpack.c.bf16 %v1051_v37, %v1051_v37 }
 0x2d5   : > { %v1056_v41 = vadd.f32 %v4355_v31, %v1055_v39  ;;  %3408 = vmatmul.msk.bf16.vlgmr.msra.gmra.mxu0 %vm909_vm2, %v1097_v40 }
 0x2d6   : > { %v4357_v43 = vpop.eup %4356 }
 0x2d7   : > { %v1068_v45 = vmul.f32 %v4357_v43, %v1033_v33  ;;  %v1036_v46 = vpop.xlane.xlu2 %1035  ;;  %v1060_v47 = vsel %vm1059_vm10, %v4355_v31, %v1056_v41  ;;  %vm1073_vm12 = vweird.f32 %v4357_v43 }
 0x2d8   : > { %4358 = vrcp.f32 %v1036_v46  ;;  %v1065_v51 = vsel %vm1062_vm11, %v1064_v48, %v1060_v47  ;;  %vm1074_vm14 = vmor %vm1072_vm13, %vm1073_vm12  ;;  %v1093_v1 = vand.u32 2147483648, %v1036_v46  ;;  %v1091_v4 = vand.u32 2147483647, %v1036_v46 }
 0x2d9   : > { %v1069_v49 = vsub.f32 1.0, %v1068_v45  ;;  %v1066_v56 = vmul.f32 %v4743_v6, %v1065_v51  ;;  %vm1087_vm4 = vweird.f32 %v1036_v46  ;;  %v4338_v45 = vld [vmem:[%s5219_s23] ss:$0 sm:$0xff]  ;;  %s5223_s23 = sld [smem:[#allocation24_spill]] (!%p4072_p1) }
 0x2da   : > { %v1094_v7 = vor.u32 1.1754944e-38, %v1093_v1  ;;  %vm1092_vm6 = vcmp.eq.f32.partialorder %v1091_v4, 8.507059e+37  ;;  %v4114_v1 = vld [vmem:[%s4682_s3 + $0x84] sm:$0xf]  ;;  %v3490_v4 = vld [vmem:[%s4682_s3 + $0x88] sm:$0xf] }
 0x2db   : > { %v1070_v52 = vmul.f32 %v4357_v43, %v1069_v49  ;;  %v1098_v2 = vpack.c.bf16 %v1066_v56, %v1066_v56 }
 0x2dd   : > { %v1071_v54 = vadd.f32 %v4357_v43, %v1070_v52  ;;  %v4469_v52 = vmov 32.0  }
 0x2de   : > { %v4359_v55 = vpop.eup %4358  ;;  %4360 = vrcp.f32 %v4469_v52 }
 0x2df   : > { %v1075_v58 = vsel %vm1074_vm14, %v4357_v43, %v1071_v54  ;;  %v1083_v59 = vmul.f32 %v4359_v55, %v1036_v46  ;;  %v1124_v60 = vpop.permute.xlu2 %1123  ;;  %vm1088_vm0 = vweird.f32 %v4359_v55 }
 0x2e0   : > { %v1080_v61 = vsel %vm1077_vm15, %v1079_v57, %v1075_v58  ;;  %v1129_v62 = vsel %vm1106_vm3, %v1124_v60, 0  ;;  %vm1089_vm5 = vmor %vm1087_vm4, %vm1088_vm0 }
 0x2e1   : > { %v1081_v63 = vmul.f32 %v4748_v14, %v1080_v61  ;;  %v1084_v0 = vsub.f32 1.0, %v1083_v59  ;;  %1138 = vmatpush.bf16.msra.mxu1 %v1129_v62  ;;  %v1198_v14 = vsel %vm1106_vm3, %v1190_v13, 0  ;;  %v4106_v13 = vld [vmem:[%s4682_s3 + $0x3c] sm:$0xf0] }
 0x2e2   : > { %1207 = vmatpush.bf16.msrb.mxu0 %v1198_v14  ;;  %v4098_v14 = vld [vmem:[%s4682_s3 + $0x4] sm:$0xf] }
 0x2e3   : > { %v1085_v3 = vmul.f32 %v4359_v55, %v1084_v0  ;;  %v1099_v5 = vpack.c.bf16 %v1081_v63, %v1081_v63  ;;  %v3482_v63 = vld [vmem:[%s4682_s3 + $0x80] sm:$0xf] }
 0x2e4   : > { %3409 = vmatmul.msk.bf16.vlgmr.msra.gmra.mxu1 %vm909_vm2, %v1098_v2  ;;  %v4361_v53 = vpop.eup %4360  ;;  %v4122_v0 = vld [vmem:[%s4682_s3 + $0xbc] sm:$0xf0] }
 0x2e5   : > { %v1086_v6 = vadd.f32 %v4359_v55, %v1085_v3  ;;  %3410 = vmatmul.msk.bf16.vlgmr.msra.gmra.mxu2 %vm909_vm2, %v1099_v5  ;;  %1226 = vmatpush.bf16.msrb.mxu1 %v1217_v16  ;;  %v1289_v54 = vmul.f32 32.0, %v4361_v53  ;;  %v3483_v2 = vor.u32 %v4122_v0, %v3482_v63  ;;  %v3484_v3 = vld [vmem:[%s4682_s3 + $0xc0] sm:$0xf0]  ;;  %v4123_v5 = vld [vmem:[%s4682_s3 + $0xc4] sm:$0xf0] }
 0x2e6   : > { %v3420_v16 = vld [vmem:[%s4682_s3 + $0x40] sm:$0xf0]  ;;  %v3514_v63 = vld [vmem:[%s4682_s3 + $0xa0] sm:$0xf] }
 0x2e7   : > { %v1090_v9 = vsel %vm1089_vm5, %v4359_v55, %v1086_v6  ;;  %v1290_v55 = vsub.f32 1.0, %v1289_v54  ;;  %v3487_v6 = vor.u32 %v4114_v1, %v3484_v3  ;;  %1560 = vmatpush.bf16.msra.mxu0 %v3483_v2  ;;  %v3423_v20 = vor.u32 %v4098_v14, %v3420_v16  ;;  %v4126_v0 = vld [vmem:[%s4682_s3 + $0xdc] sm:$0xf0]  ;;  %v4118_v1 = vld [vmem:[%s4682_s3 + $0xa4] sm:$0xf] }
 0x2e8   : > { %v1095_v10 = vsel %vm1092_vm6, %v1094_v7, %v1090_v9  ;;  %v3491_v7 = vor.u32 %v4123_v5, %v3490_v4  ;;  %v4115_v9 = vld [vmem:[%s4682_s3 + $0x8c] sm:$0xf]  ;;  %v3516_v2 = vld [vmem:[%s4682_s3 + $0xe0] sm:$0xf0]  ;;  %v3522_v3 = vld [vmem:[%s4682_s3 + $0xa8] sm:$0xf] }
 0x2e9   : > { %v1096_v11 = vmul.f32 %v4753_v19, %v1095_v10  ;;  %v1291_v56 = vmul.f32 %v4361_v53, %v1290_v55  ;;  %v3492_v10 = vld [vmem:[%s4682_s3 + $0xc8] sm:$0xf0]  ;;  %1573 = vmatpush.bf16.msra.mxu1 %v3487_v6  ;;  %v4127_v5 = vld [vmem:[%s4682_s3 + $0xe4] sm:$0xf0]  ;;  %v3452_v16 = vld [vmem:[%s4682_s3 + $0x60] sm:$0xf0] }
 0x2ea   : > { %1586 = vmatpush.bf16.msra.mxu2 %v3491_v7  ;;  %v4119_v6 = vld [vmem:[%s4682_s3 + $0xac] sm:$0xf] }
 0x2eb   : > { %v1100_v12 = vpack.c.bf16 %v1096_v11, %v1096_v11  ;;  %v1292_v57 = vadd.f32 %v4361_v53, %v1291_v56  ;;  %v3495_v11 = vor.u32 %v4115_v9, %v3492_v10  ;;  %v3524_v7 = vld [vmem:[%s4682_s3 + $0xe8] sm:$0xf0]  ;;  %v3515_v9 = vor.u32 %v4126_v0, %v3514_v63  ;;  %v4142_v63 = vld [vmem:[%s4688_s30 + $0x60] sm:$0xff] }
 0x2ec   : > { %v3519_v10 = vor.u32 %v4118_v1, %v3516_v2  ;;  %v3527_v14 = vor.u32 %v4119_v6, %v3524_v7  ;;  %v4150_v0 = vld [vmem:[%s4688_s30 + $0xa0] sm:$0xff]  ;;  %v4133_v2 = vld [vmem:[%s4688_s30 + $0x18] sm:$0xff]  ;;  %v4132_v7 = vld [vmem:[%s4688_s30 + $0x10] sm:$0xff] }
 0x2ed   : > { %3411 = vmatmul.msk.bf16.vlgmr.msra.gmra.mxu3 %vm909_vm2, %v1100_v12  ;;  %v3418_v12 = vld [vmem:[%s4682_s3] sm:$0xf]  ;;  %1574 = vmatpush.bf16.msra.mxu1 %v3423_v20  ;;  %v4103_v20 = vld [vmem:[%s4682_s3 + $0x2c] sm:$0xf]  ;;  %v4157_v6 = vld [vmem:[%s4688_s30 + $0xd8] sm:$0xff] }
 0x2ee   : > { %1599 = vmatpush.bf16.msra.mxu3 %v3495_v11  ;;  %v3419_v15 = vor.u32 %v4106_v13, %v3418_v12  ;;  %1587 = vmatpush.bf16.msra.mxu2 %v3427_v21  ;;  %v3450_v11 = vld [vmem:[%s4682_s3 + $0x20] sm:$0xf]  ;;  %v3523_v13 = vor.u32 %v4127_v5, %v3522_v3  ;;  %v3460_v21 = vld [vmem:[%s4682_s3 + $0x68] sm:$0xf0]  ;;  %v4141_v3 = vld [vmem:[%s4688_s30 + $0x58] sm:$0xff] }
 0x2ef   : > { %v4110_v12 = vld [vmem:[%s4682_s3 + $0x5c] sm:$0xf0]  ;;  %v4149_v5 = vld [vmem:[%s4688_s30 + $0x98] sm:$0xff] }
 0x2f0   : > { %1561 = vmatpush.bf16.msra.mxu0 %v3419_v15  ;;  %v4102_v15 = vld [vmem:[%s4682_s3 + $0x24] sm:$0xf] }
 0x2f1   : > { %v4158_v1 = vld [vmem:[%s4688_s30 + $0xe0] sm:$0xff] }
 0x352   : > { %v1119_v19 = vpop.f32.mrf.mxu0 }
 0x353   : > { %v1186_v22 = vpack.c.bf16 %v1119_v19, %v1119_v19  ;;  %v4099_v19 = vld [vmem:[%s4682_s3 + $0xc] sm:$0xf] }
 0x355   : > { %3412 = vmatmul.msk.bf16.vlgmr.msrb.gmra.mxu0 %vm909_vm2, %v1186_v22  ;;  %v3428_v22 = vld [vmem:[%s4682_s3 + $0x48] sm:$0xf0] }
 0x35a   : > { %v1121_v23 = vpop.f32.mrf.mxu0 }
 0x35b   : > { %v3431_v23 = vor.u32 %v4099_v19, %v3428_v22  ;;  %v3451_v19 = vor.u32 %v4110_v12, %v3450_v11  ;;  %v3455_v22 = vor.u32 %v4102_v15, %v3452_v16  ;;  %v4156_v11 = vld [vmem:[%s4688_s30 + $0xd0] sm:$0xff]  ;;  %v4131_v12 = vld [vmem:[%s4688_s30 + $0x8] sm:$0xff]  ;;  %v4130_v15 = vld [vmem:[%s4688_s30] sm:$0xff] }
 0x35c   : > { %v4138_v16 = vld [vmem:[%s4688_s30 + $0x40] sm:$0xff] }
 0x35d   : > { %1600 = vmatpush.bf16.msra.mxu3 %v3431_v23  ;;  %v3459_v23 = vor.u32 %v4111_v18, %v3458_v17  ;;  %v4169_v17 = vld [vmem:[%s4688_s30 + $0x138] sm:$0xff] }
 0x35e   : > { %v4177_v18 = vld [vmem:[%s4688_s30 + $0x178] sm:$0xff] }
 0x361   : > { %v1140_v24 = vpop.f32.mrf.mxu1 }
 0x362   : > { %v1187_v25 = vpack.c.bf16 %v1140_v24, %v1140_v24 }
 0x364   : > { %3413 = vmatmul.msk.bf16.vlgmr.msrb.gmra.mxu1 %vm909_vm2, %v1187_v25  ;;  %v3498_v25 = vld [vmem:[%s4682_s3 + $0x90] sm:$0xf] }
 0x368   : > { %v1161_v26 = vpop.f32.mrf.mxu2 }
 0x369   : > { %v1188_v27 = vpack.c.bf16 %v1161_v26, %v1161_v26  ;;  %v1142_v28 = vpop.f32.mrf.mxu1  ;;  %v4124_v26 = vld [vmem:[%s4682_s3 + $0xcc] sm:$0xf0] }
 0x36b   : > { %3414 = vmatmul.msk.bf16.vlgmr.msrb.gmra.mxu2 %vm909_vm2, %v1188_v27  ;;  %v4116_v27 = vld [vmem:[%s4682_s3 + $0x94] sm:$0xf] }
 0x370   : > { %v1163_v29 = vpop.f32.mrf.mxu2  ;;  %v1182_v30 = vpop.f32.mrf.mxu3 }
 0x371   : > { %v1189_v31 = vpack.c.bf16 %v1182_v30, %v1182_v30  ;;  %v3499_v29 = vor.u32 %v4124_v26, %v3498_v25  ;;  %v3500_v30 = vld [vmem:[%s4682_s3 + $0xd0] sm:$0xf0]  ;;  %v3530_v25 = vld [vmem:[%s4682_s3 + $0xb0] sm:$0xf] }
 0x372   : > { %v4128_v26 = vld [vmem:[%s4682_s3 + $0xec] sm:$0xf0] }
 0x373   : > { %3415 = vmatmul.msk.bf16.vlgmr.msrb.gmra.mxu3 %vm909_vm2, %v1189_v31  ;;  %vm1293_vm2 = vweird.f32 %v4361_v53  ;;  %v3506_v31 = vld [vmem:[%s4682_s3 + $0x98] sm:$0xf]  ;;  %1612 = vmatpush.bf16.msrb.mxu0 %v3499_v29 }
 0x374   : > { %v4791_v58 = vsel %vm1293_vm2, %v4361_v53, %v1292_v57  ;;  %v4339_v57 = vld [vmem:[%s5220_s15] ss:$0 sm:$0xff]  ;;  %v3538_v29 = vld [vmem:[%s4682_s3 + $0xb8] sm:$0xf]  ;;  %s5224_s15 = sld [smem:[#allocation25_spill]] (!%p4072_p1) }
 0x378   : > { %v1184_v32 = vpop.f32.mrf.mxu3 }
 0x379   : > { %v4125_v32 = vld [vmem:[%s4682_s3 + $0xd4] sm:$0xf0] }
 0x3d2   : > { %v1209_v34 = vpop.f32.mrf.mxu0 }
 0x3d3   : > { %v1270_v39 = vsel %vm808_vm1, %v1209_v34, 0.0  ;;  %v3503_v34 = vor.u32 %v4116_v27, %v3500_v30  ;;  %v4120_v27 = vld [vmem:[%s4682_s3 + $0xb4] sm:$0xf]  ;;  %v4129_v30 = vld [vmem:[%s4682_s3 + $0xf4] sm:$0xf0] }
 0x3d5   : > { %1625 = vmatpush.bf16.msrb.mxu1 %v3503_v34  ;;  %v3531_v34 = vor.u32 %v4128_v26, %v3530_v25  ;;  %v4184_v25 = vld [vmem:[%s4688_s30 + $0x1b0] sm:$0xff] }
 0x3d6   : > { %v4192_v26 = vld [vmem:[%s4688_s30 + $0x1f0] sm:$0xff] }
 0x3da   : > { %v1211_v35 = vpop.f32.mrf.mxu0 }
 0x3db   : > { %v3507_v35 = vor.u32 %v4125_v32, %v3506_v31  ;;  %v4121_v31 = vld [vmem:[%s4682_s3 + $0xbc] sm:$0xf] }
 0x3dc   : > { %v3540_v32 = vld [vmem:[%s4682_s3 + $0xf8] sm:$0xf0] }
 0x3dd   : > { %1638 = vmatpush.bf16.msrb.mxu2 %v3507_v35 }
 0x3e1   : > { %v1228_v33 = vpop.f32.mrf.mxu1 }
 0x3e2   : > { %v1271_v38 = vsel %vm808_vm1, %v1228_v33, 0.0  ;;  %v4117_v33 = vld [vmem:[%s4682_s3 + $0x9c] sm:$0xf] }
 0x3e3   : > { %v1272_v41 = vadd.f32 %v1271_v38, %v1270_v39 }
 0x3e9   : > { %v1230_v36 = vpop.f32.mrf.mxu1 }
 0x3ea   : > { %v3508_v36 = vld [vmem:[%s4682_s3 + $0xd8] sm:$0xf0] }
 0x3eb   : > { %v3511_v39 = vor.u32 %v4117_v33, %v3508_v36  ;;  %v3466_v33 = vld [vmem:[%s4682_s3 + $0x30] sm:$0xf] }
 0x3ec   : > { %v4112_v36 = vld [vmem:[%s4682_s3 + $0x6c] sm:$0xf0] }
 0x3ed   : > { %1651 = vmatpush.bf16.msrb.mxu3 %v3511_v39  ;;  %v4104_v39 = vld [vmem:[%s4682_s3 + $0x34] sm:$0xf] }
 0x3ee   : > { %v1247_v37 = vpop.f32.mrf.mxu2 }
 0x3ef   : > { %v1273_v40 = vsel %vm808_vm1, %v1247_v37, 0.0  ;;  %v3434_v37 = vld [vmem:[%s4682_s3 + $0x10] sm:$0xf] }
 0x3f0   : > { %v1274_v42 = vadd.f32 %v1273_v40, %v1272_v41  ;;  %v4108_v40 = vld [vmem:[%s4682_s3 + $0x4c] sm:$0xf0]  ;;  %v4100_v41 = vld [vmem:[%s4682_s3 + $0x14] sm:$0xf] }
 0x3f6   : > { %v1249_v43 = vpop.f32.mrf.mxu2  ;;  %v1266_v44 = vpop.f32.mrf.mxu3 }
 0x3f7   : > { %v1275_v46 = vsel %vm808_vm1, %v1266_v44, 0.0  ;;  %v3436_v43 = vld [vmem:[%s4682_s3 + $0x50] sm:$0xf0]  ;;  %v3442_v44 = vld [vmem:[%s4682_s3 + $0x18] sm:$0xf] }
 0x3f8   : > { %v1276_v47 = vadd.f32 %v1275_v46, %v1274_v42  ;;  %v3435_v42 = vor.u32 %v4108_v40, %v3434_v37  ;;  %v3439_v46 = vor.u32 %v4100_v41, %v3436_v43  ;;  %v3539_v37 = vor.u32 %v4129_v30, %v3538_v29  ;;  %v3468_v40 = vld [vmem:[%s4682_s3 + $0x70] sm:$0xf0]  ;;  %v3474_v41 = vld [vmem:[%s4682_s3 + $0x38] sm:$0xf]  ;;  %v4105_v43 = vld [vmem:[%s4682_s3 + $0x3c] sm:$0xf] }
 0x3f9   : > { %v4183_v29 = vld [vmem:[%s4688_s30 + $0x1a8] sm:$0xff] }
 0x3fa   : > { %v1281_v48 = vadd.f32 %v4338_v45, %v1276_v47  ;;  %v4109_v45 = vld [vmem:[%s4682_s3 + $0x54] sm:$0xf0]  ;;  %1613 = vmatpush.bf16.msrb.mxu0 %v3435_v42  ;;  %1626 = vmatpush.bf16.msrb.mxu1 %v3439_v46  ;;  %v3471_v46 = vor.u32 %v4104_v39, %v3468_v40  ;;  %v4191_v30 = vld [vmem:[%s4688_s30 + $0x1e8] sm:$0xff] }
 0x3fb   : > { %v3443_v47 = vor.u32 %v4109_v45, %v3442_v44  ;;  %v4113_v42 = vld [vmem:[%s4682_s3 + $0x74] sm:$0xf0]  ;;  %v3476_v44 = vld [vmem:[%s4682_s3 + $0x78] sm:$0xf0]  ;;  %v3467_v45 = vor.u32 %v4112_v36, %v3466_v33 }
 0x3fc   : > { %v1282_v49 = vadd.f32 %v1281_v48, %v4711_v8  ;;  %v4101_v48 = vld [vmem:[%s4682_s3 + $0x1c] sm:$0xf] }
 0x3fd   : > { %1639 = vmatpush.bf16.msrb.mxu2 %v3443_v47  ;;  %v3475_v47 = vor.u32 %v4113_v42, %v3474_v41  ;;  %v4165_v33 = vld [vmem:[%s4688_s30 + $0x118] sm:$0xff]  ;;  %v4163_v41 = vld [vmem:[%s4688_s30 + $0x108] sm:$0xff] }
 0x3fe   : > { %v1268_v50 = vpop.f32.mrf.mxu3  ;;  %v1285_v51 = vsel %vm808_vm1, %v1282_v49, 0.0  ;;  %v4173_v36 = vld [vmem:[%s4688_s30 + $0x158] sm:$0xff]  ;;  %v4171_v42 = vld [vmem:[%s4688_s30 + $0x148] sm:$0xff] }
 0x3ff   : > { %1286 = vadd.xlane.f32.xlu0 %v1285_v51  ;;  %v4181_v39 = vld [vmem:[%s4688_s30 + $0x198] sm:$0xff] }
 0x400   : > { %v4189_v40 = vld [vmem:[%s4688_s30 + $0x1d8] sm:$0xff] }
 0x472   : > { %v1287_v8 = vpop.xlane.xlu0 %1286 }
 0x473   : > { %v1295_v59 = vmul.f32 %v4791_v58, %v1287_v8 }
 0x475   : > { %v4794_v60 = vsub.f32 %v1282_v49, %v1295_v59  ;;  %v3444_v49 = vld [vmem:[%s4682_s3 + $0x58] sm:$0xf0]  ;;  %v4340_v59 = vld [vmem:[%s5221_s26] ss:$0 sm:$0xff]  ;;  %s5225_s26 = sld [smem:[#allocation27_spill]] (!%p4072_p1) }
 0x476   : > { %v3447_v50 = vor.u32 %v4101_v48, %v3444_v49  ;;  %v3479_v48 = vor.u32 %v4105_v43, %v3476_v44  ;;  %v4137_v49 = vld [vmem:[%s4688_s30 + $0x38] sm:$0xff]  ;;  %v4180_v43 = vld [vmem:[%s4688_s30 + $0x190] sm:$0xff] }
 0x477   : > { %v1297_v61 = vmul.f32 %v4794_v60, %v4794_v60  ;;  %v4188_v44 = vld [vmem:[%s4688_s30 + $0x1d0] sm:$0xff] }
 0x478   : > { %1652 = vmatpush.bf16.msrb.mxu3 %v3447_v50  ;;  %v4145_v50 = vld [vmem:[%s4688_s30 + $0x78] sm:$0xff] }
 0x479   : > { %v1298_v62 = vsel %vm808_vm1, %v1297_v61, 0.0 }
 0x47a   : > { %1299 = vadd.xlane.f32.xlu2 %v1298_v62 }
 0x4ed   : > { %v1300_v24 = vpop.xlane.xlu2 %1299 }
 0x4ee   : > { %v1301_v28 = vmul.f32 %v1300_v24, %v4791_v58  ;;  %v3463_v24 = vor.u32 %v4103_v20, %v3460_v21  ;;  %v4146_v20 = vld [vmem:[%s4688_s30 + $0x80] sm:$0xff] }
 0x4ef   : > { %v4154_v21 = vld [vmem:[%s4688_s30 + $0xc0] sm:$0xff] }
 0x4f0   : > { %v1302_v38 = vadd.f32 1e-05, %v1301_v28  ;;  %v3532_v28 = vld [vmem:[%s4682_s3 + $0xf0] sm:$0xf0] }
 0x4f1   : > { %v3535_v35 = vor.u32 %v4120_v27, %v3532_v28  ;;  %v4167_v27 = vld [vmem:[%s4688_s30 + $0x128] sm:$0xff] }
 0x4f2   : > { %4362 = vrsqrt.f32 %v1302_v38  ;;  %vm1309_vm7 = vweird.f32 %v1302_v38  ;;  %v4175_v28 = vld [vmem:[%s4688_s30 + $0x168] sm:$0xff] }
 0x4f8   : > { %v4363_v51 = vpop.eup %4362 }
 0x4f9   : > { %v1304_v52 = vmul.f32 %v4363_v51, %v1302_v38  ;;  %vm1310_vm3 = vweird.f32 %v4363_v51  ;;  %v3543_v38 = vor.u32 %v4121_v31, %v3540_v32  ;;  %v4166_v31 = vld [vmem:[%s4688_s30 + $0x120] sm:$0xff] }
 0x4fa   : > { %vm1311_vm8 = vmor %vm1309_vm7, %vm1310_vm3  ;;  %v4174_v32 = vld [vmem:[%s4688_s30 + $0x160] sm:$0xff] }
 0x4fb   : > { %v1305_v53 = vmul.f32 %v4363_v51, %v1304_v52  ;;  %v4161_v52 = vld [vmem:[%s4688_s30 + $0xf8] sm:$0xff] }
 0x4fd   : > { %v1306_v54 = vmul.f32 0.5, %v1305_v53  ;;  %v4136_v53 = vld [vmem:[%s4688_s30 + $0x30] sm:$0xff] }
 0x4ff   : > { %v1307_v55 = vsub.f32 1.5, %v1306_v54  ;;  %v4144_v54 = vld [vmem:[%s4688_s30 + $0x70] sm:$0xff] }
 0x501   : > { %v1308_v56 = vmul.f32 %v4363_v51, %v1307_v55  ;;  %v4152_v55 = vld [vmem:[%s4688_s30 + $0xb0] sm:$0xff] }
 0x503   : > { %v1312_v8 = vsel %vm1311_vm8, %v4363_v51, %v1308_v56  ;;  %v4153_v51 = vld [vmem:[%s4688_s30 + $0xb8] sm:$0xff]  ;;  %v4160_v56 = vld [vmem:[%s4688_s30 + $0xf0] sm:$0xff] }
 0x504   : > { %v1313_v61 = vmul.f32 %v1312_v8, %v4794_v60  ;;  %v4143_v8 = vld [vmem:[%s4688_s30 + $0x68] sm:$0xff] }
 0x506   : > { %v1317_v62 = vmul.f32 %v4339_v57, %v1313_v61  ;;  %v4135_v57 = vld [vmem:[%s4688_s30 + $0x28] sm:$0xff] }
 0x507   : > { %v4159_v61 = vld [vmem:[%s4688_s30 + $0xe8] sm:$0xff] }
 0x508   : > { %v4848_v4 = vadd.f32 %v4340_v59, %v1317_v62  ;;  %v4151_v59 = vld [vmem:[%s4688_s30 + $0xa8] sm:$0xff]  ;;  %v4134_v62 = vld [vmem:[%s4688_s30 + $0x20] sm:$0xff] }
 0x50a   : > { %v4855_v60 = vpack.c.bf16 %v4848_v4, %v4848_v4 }
 0x50c   : > { %3544 = vmatmul.msk.bf16.vlgmr.msra.gmra.mxu0 %vm808_vm1, %v4855_v60  ;;  %3545 = vmatmul.msk.bf16.vlgmr.msra.gmra.mxu1 %vm808_vm1, %v4855_v60 }
 0x50d   : > { %3546 = vmatmul.msk.bf16.vlgmr.msra.gmra.mxu2 %vm808_vm1, %v4855_v60  ;;  %3547 = vmatmul.msk.bf16.vlgmr.msra.gmra.mxu3 %vm808_vm1, %v4855_v60 }
 0x50e   : > { %1664 = vmatpush.bf16.msra.mxu0 %v3515_v9  ;;  %1677 = vmatpush.bf16.msra.mxu1 %v3519_v10  ;;  %v4140_v9 = vld [vmem:[%s4688_s30 + $0x50] sm:$0xff] }
 0x50f   : > { %1690 = vmatpush.bf16.msra.mxu2 %v3523_v13  ;;  %1703 = vmatpush.bf16.msra.mxu3 %v3527_v14  ;;  %v4148_v10 = vld [vmem:[%s4688_s30 + $0x90] sm:$0xff]  ;;  %v4147_v13 = vld [vmem:[%s4688_s30 + $0x88] sm:$0xff] }
 0x510   : > { %v4155_v14 = vld [vmem:[%s4688_s30 + $0xc8] sm:$0xff] }
 0x512   : > { %1665 = vmatpush.bf16.msra.mxu0 %v3451_v19  ;;  %1678 = vmatpush.bf16.msra.mxu1 %v3455_v22  ;;  %v4185_v19 = vld [vmem:[%s4688_s30 + $0x1b8] sm:$0xff] }
 0x513   : > { %1691 = vmatpush.bf16.msra.mxu2 %v3459_v23  ;;  %1704 = vmatpush.bf16.msra.mxu3 %v3463_v24  ;;  %v4193_v22 = vld [vmem:[%s4688_s30 + $0x1f8] sm:$0xff]  ;;  %v4168_v23 = vld [vmem:[%s4688_s30 + $0x130] sm:$0xff] }
 0x514   : > { %v4176_v24 = vld [vmem:[%s4688_s30 + $0x170] sm:$0xff] }
 0x51c   : > { %3548 = vmatmul.msk.bf16.vlgmr.msrb.gmra.mxu0 %vm808_vm1, %v4855_v60  ;;  %3549 = vmatmul.msk.bf16.vlgmr.msrb.gmra.mxu1 %vm808_vm1, %v4855_v60 }
 0x51d   : > { %3550 = vmatmul.msk.bf16.vlgmr.msrb.gmra.mxu2 %vm808_vm1, %v4855_v60  ;;  %3551 = vmatmul.msk.bf16.vlgmr.msrb.gmra.mxu3 %vm808_vm1, %v4855_v60 }
 0x51e   : > { %1716 = vmatpush.bf16.msrb.mxu0 %v3531_v34  ;;  %1729 = vmatpush.bf16.msrb.mxu1 %v3535_v35  ;;  %v4182_v34 = vld [vmem:[%s4688_s30 + $0x1a0] sm:$0xff] }
 0x51f   : > { %1742 = vmatpush.bf16.msrb.mxu2 %v3539_v37  ;;  %1755 = vmatpush.bf16.msrb.mxu3 %v3543_v38  ;;  %v4190_v35 = vld [vmem:[%s4688_s30 + $0x1e0] sm:$0xff]  ;;  %v4164_v37 = vld [vmem:[%s4688_s30 + $0x110] sm:$0xff] }
 0x520   : > { %v4172_v38 = vld [vmem:[%s4688_s30 + $0x150] sm:$0xff] }
 0x522   : > { %1717 = vmatpush.bf16.msrb.mxu0 %v3467_v45  ;;  %1730 = vmatpush.bf16.msrb.mxu1 %v3471_v46  ;;  %v4162_v45 = vld [vmem:[%s4688_s30 + $0x100] sm:$0xff] }
 0x523   : > { %1743 = vmatpush.bf16.msrb.mxu2 %v3475_v47  ;;  %1756 = vmatpush.bf16.msrb.mxu3 %v3479_v48  ;;  %v4170_v46 = vld [vmem:[%s4688_s30 + $0x140] sm:$0xff]  ;;  %v4179_v47 = vld [vmem:[%s4688_s30 + $0x188] sm:$0xff] }
 0x524   : > { %v4187_v48 = vld [vmem:[%s4688_s30 + $0x1c8] sm:$0xff] }
 0x52c   : > { %3552 = vmatmul.msk.bf16.vlgmr.msra.gmra.mxu0 %vm808_vm1, %v4855_v60  ;;  %3553 = vmatmul.msk.bf16.vlgmr.msra.gmra.mxu1 %vm808_vm1, %v4855_v60 }
 0x52d   : > { %3554 = vmatmul.msk.bf16.vlgmr.msra.gmra.mxu2 %vm808_vm1, %v4855_v60  ;;  %3555 = vmatmul.msk.bf16.vlgmr.msra.gmra.mxu3 %vm808_vm1, %v4855_v60 }
 0x52e   : > { %2822 = vmatpush.bf16.msra.mxu0 %v4137_v49  ;;  %2835 = vmatpush.bf16.msra.mxu1 %v4145_v50  ;;  %v4178_v49 = vld [vmem:[%s4688_s30 + $0x180] sm:$0xff] }
 0x52f   : > { %2848 = vmatpush.bf16.msra.mxu2 %v4153_v51  ;;  %2861 = vmatpush.bf16.msra.mxu3 %v4161_v52  ;;  %v4186_v50 = vld [vmem:[%s4688_s30 + $0x1c0] sm:$0xff] }
 0x530   : > { %v4978_v51 = vld [vmem:[%s4677_s14] sm:$0xff] }
 0x531   : > { %v1359_v52 = vperm.slane %v4978_v51, 0 }
 0x532   : > { %2823 = vmatpush.bf16.msra.mxu0 %v4136_v53  ;;  %2836 = vmatpush.bf16.msra.mxu1 %v4144_v54  ;;  %v1360_v53 = vperm.slane %v4978_v51, 1 }
 0x533   : > { %2849 = vmatpush.bf16.msra.mxu2 %v4152_v55  ;;  %2862 = vmatpush.bf16.msra.mxu3 %v4160_v56 }
 0x536   : > { %2824 = vmatpush.bf16.msra.mxu0 %v4135_v57  ;;  %2837 = vmatpush.bf16.msra.mxu1 %v4143_v8 }
 0x537   : > { %2850 = vmatpush.bf16.msra.mxu2 %v4151_v59  ;;  %2863 = vmatpush.bf16.msra.mxu3 %v4159_v61  ;;  %v1361_v61 = vperm.slane %v4978_v51, 2 }
 0x53a   : > { %2825 = vmatpush.bf16.msra.mxu0 %v4134_v62  ;;  %2838 = vmatpush.bf16.msra.mxu1 %v4142_v63  ;;  %v1362_v62 = vperm.slane %v4978_v51, 3  ;;  %v4201_v63 = vld [vmem:[%s4688_s30 + $0x238] sm:$0xff] }
 0x53b   : > { %2851 = vmatpush.bf16.msra.mxu2 %v4150_v0  ;;  %2864 = vmatpush.bf16.msra.mxu3 %v4158_v1  ;;  %v4209_v0 = vld [vmem:[%s4688_s30 + $0x278] sm:$0xff] }
 0x53c   : > { %3556 = vmatmul.msk.bf16.vlgmr.msrb.gmra.mxu0 %vm808_vm1, %v4855_v60  ;;  %3557 = vmatmul.msk.bf16.vlgmr.msrb.gmra.mxu1 %vm808_vm1, %v4855_v60 }
 0x53d   : > { %3558 = vmatmul.msk.bf16.vlgmr.msrb.gmra.mxu2 %vm808_vm1, %v4855_v60  ;;  %3559 = vmatmul.msk.bf16.vlgmr.msrb.gmra.mxu3 %vm808_vm1, %v4855_v60  ;;  %v4139_v60 = vld [vmem:[%s4688_s30 + $0x48] sm:$0xff] }
 0x53e   : > { %2826 = vmatpush.bf16.msra.mxu0 %v4133_v2  ;;  %2839 = vmatpush.bf16.msra.mxu1 %v4141_v3 }
 0x53f   : > { %2852 = vmatpush.bf16.msra.mxu2 %v4149_v5  ;;  %2865 = vmatpush.bf16.msra.mxu3 %v4157_v6 }
 0x542   : > { %2827 = vmatpush.bf16.msra.mxu0 %v4132_v7  ;;  %2840 = vmatpush.bf16.msra.mxu1 %v4140_v9 }
 0x543   : > { %2853 = vmatpush.bf16.msra.mxu2 %v4148_v10  ;;  %2866 = vmatpush.bf16.msra.mxu3 %v4156_v11  ;;  %v4200_v11 = vld [vmem:[%s4688_s30 + $0x230] sm:$0xff] }
 0x546   : > { %2828 = vmatpush.bf16.msra.mxu0 %v4131_v12  ;;  %2841 = vmatpush.bf16.msra.mxu1 %v4139_v60  ;;  %v4208_v12 = vld [vmem:[%s4688_s30 + $0x270] sm:$0xff] }
 0x547   : > { %2854 = vmatpush.bf16.msra.mxu2 %v4147_v13  ;;  %2867 = vmatpush.bf16.msra.mxu3 %v4155_v14  ;;  %v4217_v14 = vld [vmem:[%s4688_s30 + $0x2b8] sm:$0xff] }
 0x54a   : > { %2829 = vmatpush.bf16.msra.mxu0 %v4130_v15  ;;  %2842 = vmatpush.bf16.msra.mxu1 %v4138_v16  ;;  %v4225_v15 = vld [vmem:[%s4688_s30 + $0x2f8] sm:$0xff] }
 0x54b   : > { %2855 = vmatpush.bf16.msra.mxu2 %v4146_v20  ;;  %2868 = vmatpush.bf16.msra.mxu3 %v4154_v21  ;;  %v4207_v20 = vld [vmem:[%s4688_s30 + $0x268] sm:$0xff]  ;;  %v1363_v21 = vperm.slane %v4978_v51, 4 }
 0x54e   : > { %2874 = vmatpush.bf16.msrb.mxu0 %v4169_v17  ;;  %2887 = vmatpush.bf16.msrb.mxu1 %v4177_v18  ;;  %v4199_v18 = vld [vmem:[%s4688_s30 + $0x228] sm:$0xff] }
 0x54f   : > { %2900 = vmatpush.bf16.msrb.mxu2 %v4185_v19  ;;  %2913 = vmatpush.bf16.msrb.mxu3 %v4193_v22  ;;  %v1364_v19 = vperm.slane %v4978_v51, 5 }
 0x552   : > { %2875 = vmatpush.bf16.msrb.mxu0 %v4168_v23  ;;  %2888 = vmatpush.bf16.msrb.mxu1 %v4176_v24  ;;  %v4216_v24 = vld [vmem:[%s4688_s30 + $0x2b0] sm:$0xff] }
 0x553   : > { %2901 = vmatpush.bf16.msrb.mxu2 %v4184_v25  ;;  %2914 = vmatpush.bf16.msrb.mxu3 %v4192_v26  ;;  %v4224_v25 = vld [vmem:[%s4688_s30 + $0x2f0] sm:$0xff] }
 0x556   : > { %2876 = vmatpush.bf16.msrb.mxu0 %v4167_v27  ;;  %2889 = vmatpush.bf16.msrb.mxu1 %v4175_v28  ;;  %v4198_v28 = vld [vmem:[%s4688_s30 + $0x220] sm:$0xff] }
 0x557   : > { %2902 = vmatpush.bf16.msrb.mxu2 %v4183_v29  ;;  %2915 = vmatpush.bf16.msrb.mxu3 %v4191_v30  ;;  %v4206_v29 = vld [vmem:[%s4688_s30 + $0x260] sm:$0xff] }
 0x55a   : > { %2877 = vmatpush.bf16.msrb.mxu0 %v4166_v31  ;;  %2890 = vmatpush.bf16.msrb.mxu1 %v4174_v32 }
 0x55b   : > { %2903 = vmatpush.bf16.msrb.mxu2 %v4182_v34  ;;  %2916 = vmatpush.bf16.msrb.mxu3 %v4190_v35  ;;  %v4215_v35 = vld [vmem:[%s4688_s30 + $0x2a8] sm:$0xff] }
 0x55e   : > { %2878 = vmatpush.bf16.msrb.mxu0 %v4165_v33  ;;  %2891 = vmatpush.bf16.msrb.mxu1 %v4173_v36  ;;  %v4223_v33 = vld [vmem:[%s4688_s30 + $0x2e8] sm:$0xff]  ;;  %v1365_v36 = vperm.slane %v4978_v51, 6 }
 0x55f   : > { %2904 = vmatpush.bf16.msrb.mxu2 %v4181_v39  ;;  %2917 = vmatpush.bf16.msrb.mxu3 %v4189_v40  ;;  %v4197_v40 = vld [vmem:[%s4688_s30 + $0x218] sm:$0xff] }
 0x562   : > { %2879 = vmatpush.bf16.msrb.mxu0 %v4164_v37  ;;  %2892 = vmatpush.bf16.msrb.mxu1 %v4172_v38  ;;  %v1366_v37 = vperm.slane %v4978_v51, 7  ;;  %v4204_v51 = vld [vmem:[%s4688_s30 + $0x250] sm:$0xff] }
 0x563   : > { %2905 = vmatpush.bf16.msrb.mxu2 %v4180_v43  ;;  %2918 = vmatpush.bf16.msrb.mxu3 %v4188_v44  ;;  %v4214_v44 = vld [vmem:[%s4688_s30 + $0x2a0] sm:$0xff] }
 0x566   : > { %2880 = vmatpush.bf16.msrb.mxu0 %v4163_v41  ;;  %2893 = vmatpush.bf16.msrb.mxu1 %v4171_v42  ;;  %v4205_v41 = vld [vmem:[%s4688_s30 + $0x258] sm:$0xff] }
 0x567   : > { %2906 = vmatpush.bf16.msrb.mxu2 %v4179_v47  ;;  %2919 = vmatpush.bf16.msrb.mxu3 %v4187_v48 }
 0x56a   : > { %2881 = vmatpush.bf16.msrb.mxu0 %v4162_v45  ;;  %2894 = vmatpush.bf16.msrb.mxu1 %v4170_v46  ;;  %v4222_v45 = vld [vmem:[%s4688_s30 + $0x2e0] sm:$0xff] }
 0x56b   : > { %2907 = vmatpush.bf16.msrb.mxu2 %v4178_v49  ;;  %2920 = vmatpush.bf16.msrb.mxu3 %v4186_v50  ;;  %v4196_v50 = vld [vmem:[%s4688_s30 + $0x210] sm:$0xff] }
 0x589   : > { %v1563_v54 = vpop.f32.mrf.mxu0  ;;  %v1576_v55 = vpop.f32.mrf.mxu1 }
 0x58a   : > { %v1564_v56 = vadd.f32 %v1563_v54, %v1359_v52  ;;  %v1577_v57 = vadd.f32 %v1576_v55, %v1360_v53  ;;  %v5009_v54 = vld [vmem:[%s4677_s14 + $0x8] sm:$0xff]  ;;  %v4213_v55 = vld [vmem:[%s4688_s30 + $0x298] sm:$0xff] }
 0x58c   : > { %v1762_v8 = vmax.f32 %v1564_v56, 0.0  ;;  %v1763_v59 = vmax.f32 %v1577_v57, 0.0  ;;  %v4221_v56 = vld [vmem:[%s4688_s30 + $0x2d8] sm:$0xff] }
 0x58e   : > { %v1778_v1 = vpack.c.bf16 %v1762_v8, %v1762_v8  ;;  %v1779_v2 = vpack.c.bf16 %v1763_v59, %v1763_v59  ;;  %v4195_v59 = vld [vmem:[%s4688_s30 + $0x208] sm:$0xff] }
 0x590   : > { %v1589_v3 = vpop.f32.mrf.mxu2  ;;  %v1602_v5 = vpop.f32.mrf.mxu3  ;;  %2830 = vmatmul.bf16.vlgmr.msra.gmra.mxu0 %v1778_v1  ;;  %2843 = vmatmul.bf16.vlgmr.msra.gmra.mxu1 %v1779_v2  ;;  %v4212_v2 = vld [vmem:[%s4688_s30 + $0x290] sm:$0xff] }
 0x591   : > { %v1590_v6 = vadd.f32 %v1589_v3, %v1361_v61  ;;  %v1603_v7 = vadd.f32 %v1602_v5, %v1362_v62  ;;  %2926 = vmatpush.bf16.msra.mxu0 %v4201_v63  ;;  %2939 = vmatpush.bf16.msra.mxu1 %v4209_v0  ;;  %v1565_v9 = vpop.f32.mrf.mxu0  ;;  %v1578_v10 = vpop.f32.mrf.mxu1  ;;  %v4203_v61 = vld [vmem:[%s4688_s30 + $0x248] sm:$0xff]  ;;  %v1367_v62 = vperm.slane %v5009_v54, 0  ;;  %v1368_v63 = vperm.slane %v5009_v54, 1  ;;  %v4220_v3 = vld [vmem:[%s4688_s30 + $0x2d0] sm:$0xff] }
 0x592   : > { %v4194_v10 = vld [vmem:[%s4688_s30 + $0x200] sm:$0xff] }
 0x593   : > { %v1764_v60 = vmax.f32 %v1590_v6, 0.0  ;;  %v1765_v13 = vmax.f32 %v1603_v7, 0.0 }
 0x595   : > { %v1780_v16 = vpack.c.bf16 %v1764_v60, %v1764_v60  ;;  %v1781_v17 = vpack.c.bf16 %v1765_v13, %v1765_v13  ;;  %2927 = vmatpush.bf16.msra.mxu0 %v4200_v11  ;;  %2940 = vmatpush.bf16.msra.mxu1 %v4208_v12  ;;  %v4202_v11 = vld [vmem:[%s4688_s30 + $0x240] sm:$0xff]  ;;  %v4233_v12 = vld [vmem:[%s4688_s30 + $0x338] sm:$0xff] }
 0x596   : > { %v4241_v60 = vld [vmem:[%s4688_s30 + $0x378] sm:$0xff] }
 0x597   : > { %2856 = vmatmul.bf16.vlgmr.msra.gmra.mxu2 %v1780_v16  ;;  %2869 = vmatmul.bf16.vlgmr.msra.gmra.mxu3 %v1781_v17  ;;  %v4219_v16 = vld [vmem:[%s4688_s30 + $0x2c8] sm:$0xff]  ;;  %v1369_v17 = vperm.slane %v5009_v54, 2 }
 0x598   : > { %2952 = vmatpush.bf16.msra.mxu2 %v4217_v14  ;;  %2965 = vmatpush.bf16.msra.mxu3 %v4225_v15  ;;  %v1591_v22 = vpop.f32.mrf.mxu2  ;;  %v1604_v23 = vpop.f32.mrf.mxu3  ;;  %v4211_v15 = vld [vmem:[%s4688_s30 + $0x288] sm:$0xff] }
 0x599   : > { %2928 = vmatpush.bf16.msra.mxu0 %v4199_v18  ;;  %2941 = vmatpush.bf16.msra.mxu1 %v4207_v20  ;;  %v1615_v26 = vpop.f32.mrf.mxu0  ;;  %v1628_v27 = vpop.f32.mrf.mxu1  ;;  %v1370_v18 = vperm.slane %v5009_v54, 3  ;;  %v4240_v22 = vld [vmem:[%s4688_s30 + $0x370] sm:$0xff] }
 0x59a   : > { %v1616_v30 = vadd.f32 %v1615_v26, %v1363_v21  ;;  %v1629_v31 = vadd.f32 %v1628_v27, %v1364_v19  ;;  %v4232_v19 = vld [vmem:[%s4688_s30 + $0x330] sm:$0xff]  ;;  %v4218_v26 = vld [vmem:[%s4688_s30 + $0x2c0] sm:$0xff] }
 0x59c   : > { %v1766_v32 = vmax.f32 %v1616_v30, 0.0  ;;  %v1767_v34 = vmax.f32 %v1629_v31, 0.0  ;;  %2953 = vmatpush.bf16.msra.mxu2 %v4216_v24  ;;  %2966 = vmatpush.bf16.msra.mxu3 %v4224_v25  ;;  %v4210_v25 = vld [vmem:[%s4688_s30 + $0x280] sm:$0xff]  ;;  %v4249_v31 = vld [vmem:[%s4688_s30 + $0x3b8] sm:$0xff] }
 0x59d   : > { %2929 = vmatpush.bf16.msra.mxu0 %v4198_v28  ;;  %2942 = vmatpush.bf16.msra.mxu1 %v4206_v29 }
 0x59e   : > { %v1782_v38 = vpack.c.bf16 %v1766_v32, %v1766_v32  ;;  %v1783_v39 = vpack.c.bf16 %v1767_v34, %v1767_v34  ;;  %v4257_v32 = vld [vmem:[%s4688_s30 + $0x3f8] sm:$0xff] }
 0x5a0   : > { %2954 = vmatpush.bf16.msra.mxu2 %v4215_v35  ;;  %2967 = vmatpush.bf16.msra.mxu3 %v4223_v33  ;;  %v1641_v42 = vpop.f32.mrf.mxu2  ;;  %v1654_v43 = vpop.f32.mrf.mxu3  ;;  %v4231_v33 = vld [vmem:[%s4688_s30 + $0x328] sm:$0xff] }
 0x5a1   : > { %v1642_v46 = vadd.f32 %v1641_v42, %v1365_v36  ;;  %v1655_v47 = vadd.f32 %v1654_v43, %v1366_v37  ;;  %2882 = vmatmul.bf16.vlgmr.msrb.gmra.mxu0 %v1782_v38  ;;  %2895 = vmatmul.bf16.vlgmr.msrb.gmra.mxu1 %v1783_v39  ;;  %v1617_v48 = vpop.f32.mrf.mxu0  ;;  %v1630_v49 = vpop.f32.mrf.mxu1  ;;  %v4239_v36 = vld [vmem:[%s4688_s30 + $0x368] sm:$0xff]  ;;  %v4248_v39 = vld [vmem:[%s4688_s30 + $0x3b0] sm:$0xff]  ;;  %v4238_v42 = vld [vmem:[%s4688_s30 + $0x360] sm:$0xff] }
 0x5a2   : > { %2930 = vmatpush.bf16.msra.mxu0 %v4197_v40  ;;  %2943 = vmatpush.bf16.msra.mxu1 %v4205_v41  ;;  %v4256_v40 = vld [vmem:[%s4688_s30 + $0x3f0] sm:$0xff]  ;;  %v4230_v41 = vld [vmem:[%s4688_s30 + $0x320] sm:$0xff]  ;;  %v4255_v48 = vld [vmem:[%s4688_s30 + $0x3e8] sm:$0xff] }
 0x5a3   : > { %v1768_v52 = vmax.f32 %v1642_v46, 0.0  ;;  %v1769_v53 = vmax.f32 %v1655_v47, 0.0  ;;  %v4247_v47 = vld [vmem:[%s4688_s30 + $0x3a8] sm:$0xff]  ;;  %v4229_v49 = vld [vmem:[%s4688_s30 + $0x318] sm:$0xff] }
 0x5a4   : > { %2955 = vmatpush.bf16.msra.mxu2 %v4214_v44  ;;  %2968 = vmatpush.bf16.msra.mxu3 %v4222_v45 }
 0x5a5   : > { %v1784_v57 = vpack.c.bf16 %v1768_v52, %v1768_v52  ;;  %v1785_v8 = vpack.c.bf16 %v1769_v53, %v1769_v53  ;;  %v4254_v52 = vld [vmem:[%s4688_s30 + $0x3e0] sm:$0xff]  ;;  %v4228_v53 = vld [vmem:[%s4688_s30 + $0x310] sm:$0xff] }
 0x5a6   : > { %2931 = vmatpush.bf16.msra.mxu0 %v4196_v50  ;;  %2944 = vmatpush.bf16.msra.mxu1 %v4204_v51  ;;  %v4237_v50 = vld [vmem:[%s4688_s30 + $0x358] sm:$0xff]  ;;  %v4246_v51 = vld [vmem:[%s4688_s30 + $0x3a0] sm:$0xff] }
 0x5a7   : > { %2908 = vmatmul.bf16.vlgmr.msrb.gmra.mxu2 %v1784_v57  ;;  %2921 = vmatmul.bf16.vlgmr.msrb.gmra.mxu3 %v1785_v8  ;;  %v1372_v57 = vperm.slane %v5009_v54, 5 }
 0x5a8   : > { %2956 = vmatpush.bf16.msra.mxu2 %v4213_v55  ;;  %2969 = vmatpush.bf16.msra.mxu3 %v4221_v56  ;;  %v1643_v0 = vpop.f32.mrf.mxu2  ;;  %v1656_v1 = vpop.f32.mrf.mxu3  ;;  %v4236_v55 = vld [vmem:[%s4688_s30 + $0x350] sm:$0xff]  ;;  %v1371_v56 = vperm.slane %v5009_v54, 4 }
 0x5a9   : > { %v1667_v5 = vpop.f32.mrf.mxu0  ;;  %v1680_v6 = vpop.f32.mrf.mxu1  ;;  %v4253_v0 = vld [vmem:[%s4688_s30 + $0x3d8] sm:$0xff]  ;;  %v4227_v1 = vld [vmem:[%s4688_s30 + $0x308] sm:$0xff] }
 0x5aa   : > { %2932 = vmatpush.bf16.msra.mxu0 %v4195_v59  ;;  %2945 = vmatpush.bf16.msra.mxu1 %v4203_v61  ;;  %v1668_v7 = vadd.f32 %v1667_v5, %v1367_v62  ;;  %v1681_v9 = vadd.f32 %v1680_v6, %v1368_v63  ;;  %v4245_v63 = vld [vmem:[%s4688_s30 + $0x398] sm:$0xff]  ;;  %v4244_v6 = vld [vmem:[%s4688_s30 + $0x390] sm:$0xff] }
 0x5ac   : > { %v1770_v13 = vmax.f32 %v1668_v7, 0.0  ;;  %v1771_v14 = vmax.f32 %v1681_v9, 0.0  ;;  %2957 = vmatpush.bf16.msra.mxu2 %v4212_v2  ;;  %2970 = vmatpush.bf16.msra.mxu3 %v4220_v3  ;;  %v4235_v2 = vld [vmem:[%s4688_s30 + $0x348] sm:$0xff]  ;;  %v4252_v7 = vld [vmem:[%s4688_s30 + $0x3d0] sm:$0xff]  ;;  %v1373_v9 = vperm.slane %v5009_v54, 6 }
 0x5ae   : > { %v1786_v20 = vpack.c.bf16 %v1770_v13, %v1770_v13  ;;  %v1787_v21 = vpack.c.bf16 %v1771_v14, %v1771_v14  ;;  %2933 = vmatpush.bf16.msra.mxu0 %v4194_v10  ;;  %2946 = vmatpush.bf16.msra.mxu1 %v4202_v11  ;;  %v1374_v10 = vperm.slane %v5009_v54, 7  ;;  %v4226_v11 = vld [vmem:[%s4688_s30 + $0x300] sm:$0xff] }
 0x5b0   : > { %2958 = vmatpush.bf16.msra.mxu2 %v4211_v15  ;;  %2971 = vmatpush.bf16.msra.mxu3 %v4219_v16  ;;  %v1693_v23 = vpop.f32.mrf.mxu2  ;;  %v1706_v24 = vpop.f32.mrf.mxu3  ;;  %v4243_v16 = vld [vmem:[%s4688_s30 + $0x388] sm:$0xff] }
 0x5b1   : > { %v1694_v27 = vadd.f32 %v1693_v23, %v1369_v17  ;;  %v1707_v28 = vadd.f32 %v1706_v24, %v1370_v18  ;;  %2934 = vmatmul.bf16.vlgmr.msra.gmra.mxu0 %v1786_v20  ;;  %2947 = vmatmul.bf16.vlgmr.msra.gmra.mxu1 %v1787_v21  ;;  %v1669_v29 = vpop.f32.mrf.mxu0  ;;  %v1682_v30 = vpop.f32.mrf.mxu1  ;;  %v4251_v17 = vld [vmem:[%s4688_s30 + $0x3c8] sm:$0xff] }
 0x5b2   : > { %2978 = vmatpush.bf16.msrb.mxu0 %v4233_v12  ;;  %2991 = vmatpush.bf16.msrb.mxu1 %v4241_v60  ;;  %v4234_v12 = vld [vmem:[%s4688_s30 + $0x340] sm:$0xff] }
 0x5b3   : > { %v1772_v34 = vmax.f32 %v1694_v27, 0.0  ;;  %v1773_v35 = vmax.f32 %v1707_v28, 0.0 }
 0x5b4   : > { %2959 = vmatpush.bf16.msra.mxu2 %v4210_v25  ;;  %2972 = vmatpush.bf16.msra.mxu3 %v4218_v26 }
 0x5b5   : > { %v1788_v37 = vpack.c.bf16 %v1772_v34, %v1772_v34  ;;  %v1789_v38 = vpack.c.bf16 %v1773_v35, %v1773_v35 }
 0x5b6   : > { %2979 = vmatpush.bf16.msrb.mxu0 %v4232_v19  ;;  %2992 = vmatpush.bf16.msrb.mxu1 %v4240_v22  ;;  %v4242_v19 = vld [vmem:[%s4688_s30 + $0x380] sm:$0xff] }
 0x5b7   : > { %2960 = vmatmul.bf16.vlgmr.msra.gmra.mxu2 %v1788_v37  ;;  %2973 = vmatmul.bf16.vlgmr.msra.gmra.mxu3 %v1789_v38  ;;  %v4250_v22 = vld [vmem:[%s4688_s30 + $0x3c0] sm:$0xff] }
 0x5b8   : > { %3004 = vmatpush.bf16.msrb.mxu2 %v4249_v31  ;;  %3017 = vmatpush.bf16.msrb.mxu3 %v4257_v32  ;;  %v1695_v43 = vpop.f32.mrf.mxu2  ;;  %v1708_v44 = vpop.f32.mrf.mxu3  ;;  %v4341_v37 = vld [vmem:[%s747_s21] ss:$0 sm:$0xff] }
 0x5b9   : > { %v1719_v45 = vpop.f32.mrf.mxu0  ;;  %v1732_v46 = vpop.f32.mrf.mxu1 }
 0x5ba   : > { %2980 = vmatpush.bf16.msrb.mxu0 %v4231_v33  ;;  %2993 = vmatpush.bf16.msrb.mxu1 %v4239_v36  ;;  %v1720_v3 = vadd.f32 %v1719_v45, %v1371_v56  ;;  %v1733_v5 = vadd.f32 %v1732_v46, %v1372_v57 }
 0x5bc   : > { %3005 = vmatpush.bf16.msrb.mxu2 %v4248_v39  ;;  %3018 = vmatpush.bf16.msrb.mxu3 %v4256_v40  ;;  %v1774_v60 = vmax.f32 %v1720_v3, 0.0  ;;  %v1775_v13 = vmax.f32 %v1733_v5, 0.0 }
 0x5be   : > { %2981 = vmatpush.bf16.msrb.mxu0 %v4230_v41  ;;  %2994 = vmatpush.bf16.msrb.mxu1 %v4238_v42  ;;  %v1790_v21 = vpack.c.bf16 %v1774_v60, %v1774_v60  ;;  %v1791_v54 = vpack.c.bf16 %v1775_v13, %v1775_v13 }
 0x5c0   : > { %3006 = vmatpush.bf16.msrb.mxu2 %v4247_v47  ;;  %3019 = vmatpush.bf16.msrb.mxu3 %v4255_v48  ;;  %v1745_v8 = vpop.f32.mrf.mxu2  ;;  %v1758_v59 = vpop.f32.mrf.mxu3 }
 0x5c1   : > { %v1721_v61 = vpop.f32.mrf.mxu0  ;;  %v1734_v62 = vpop.f32.mrf.mxu1  ;;  %v1746_v18 = vadd.f32 %v1745_v8, %v1373_v9  ;;  %v1759_v20 = vadd.f32 %v1758_v59, %v1374_v10 }
 0x5c2   : > { %2982 = vmatpush.bf16.msrb.mxu0 %v4229_v49  ;;  %2995 = vmatpush.bf16.msrb.mxu1 %v4237_v50 }
 0x5c3   : > { %v1776_v23 = vmax.f32 %v1746_v18, 0.0  ;;  %v1777_v24 = vmax.f32 %v1759_v20, 0.0 }
 0x5c4   : > { %3007 = vmatpush.bf16.msrb.mxu2 %v4246_v51  ;;  %3020 = vmatpush.bf16.msrb.mxu3 %v4254_v52 }
 0x5c5   : > { %v1792_v25 = vpack.c.bf16 %v1776_v23, %v1776_v23  ;;  %v1793_v26 = vpack.c.bf16 %v1777_v24, %v1777_v24 }
 0x5c6   : > { %2983 = vmatpush.bf16.msrb.mxu0 %v4228_v53  ;;  %2996 = vmatpush.bf16.msrb.mxu1 %v4236_v55 }
 0x5c8   : > { %3008 = vmatpush.bf16.msrb.mxu2 %v4245_v63  ;;  %3021 = vmatpush.bf16.msrb.mxu3 %v4253_v0  ;;  %v1747_v14 = vpop.f32.mrf.mxu2  ;;  %v1760_v15 = vpop.f32.mrf.mxu3 }
 0x5ca   : > { %2984 = vmatpush.bf16.msrb.mxu0 %v4227_v1  ;;  %2997 = vmatpush.bf16.msrb.mxu1 %v4235_v2 }
 0x5cc   : > { %3009 = vmatpush.bf16.msrb.mxu2 %v4244_v6  ;;  %3022 = vmatpush.bf16.msrb.mxu3 %v4252_v7 }
 0x5ce   : > { %2985 = vmatpush.bf16.msrb.mxu0 %v4226_v11  ;;  %2998 = vmatpush.bf16.msrb.mxu1 %v4234_v12 }
 0x5d0   : > { %3010 = vmatpush.bf16.msrb.mxu2 %v4243_v16  ;;  %3023 = vmatpush.bf16.msrb.mxu3 %v4251_v17 }
 0x5d1   : > { %2986 = vmatmul.bf16.vlgmr.msrb.gmra.mxu0 %v1790_v21  ;;  %2999 = vmatmul.bf16.vlgmr.msrb.gmra.mxu1 %v1791_v54 }
 0x5d4   : > { %3011 = vmatpush.bf16.msrb.mxu2 %v4242_v19  ;;  %3024 = vmatpush.bf16.msrb.mxu3 %v4250_v22 }
 0x5d7   : > { %3012 = vmatmul.bf16.vlgmr.msrb.gmra.mxu2 %v1792_v25  ;;  %3025 = vmatmul.bf16.vlgmr.msrb.gmra.mxu3 %v1793_v26 }
 0x60d   : > { %v2831_v27 = vpop.f32.mrf.mxu0  ;;  %v2844_v28 = vpop.f32.mrf.mxu1 }
 0x60e   : > { %v2832_v40 = vadd.f32 %v4341_v37, %v2831_v27 }
 0x610   : > { %v2845_v43 = vadd.f32 %v2844_v28, %v2832_v40 }
 0x615   : > { %v2833_v29 = vpop.f32.mrf.mxu0  ;;  %v2846_v30 = vpop.f32.mrf.mxu1 }
 0x616   : > { %v4342_v29 = vld [vmem:[%s750_s2] ss:$0 sm:$0xff] }
 0x61a   : > { %v2857_v31 = vpop.f32.mrf.mxu2  ;;  %v2870_v32 = vpop.f32.mrf.mxu3 }
 0x61b   : > { %v2858_v46 = vadd.f32 %v2857_v31, %v2845_v43  ;;  %v4343_v31 = vld [vmem:[%s753_s13] ss:$0 sm:$0xff]  ;;  %s5222_s13 = sld [smem:[#allocation26_spill]] (!%p4072_p1) }
 0x61d   : > { %v2871_v49 = vadd.f32 %v2870_v32, %v2858_v46 }
 0x61e   : > { %v2883_v34 = vpop.f32.mrf.mxu0  ;;  %v2896_v35 = vpop.f32.mrf.mxu1 }
 0x61f   : > { %v2884_v52 = vadd.f32 %v2883_v34, %v2871_v49 }
 0x621   : > { %v2897_v56 = vadd.f32 %v2896_v35, %v2884_v52 }
 0x622   : > { %v2859_v33 = vpop.f32.mrf.mxu2  ;;  %v2872_v36 = vpop.f32.mrf.mxu3 }
 0x626   : > { %v2885_v38 = vpop.f32.mrf.mxu0  ;;  %v2898_v39 = vpop.f32.mrf.mxu1 }
 0x62a   : > { %v2909_v41 = vpop.f32.mrf.mxu2  ;;  %v2922_v42 = vpop.f32.mrf.mxu3 }
 0x62b   : > { %v2910_v57 = vadd.f32 %v2909_v41, %v2897_v56 }
 0x62d   : > { %v2923_v8 = vadd.f32 %v2922_v42, %v2910_v57 }
 0x62e   : > { %v2935_v44 = vpop.f32.mrf.mxu0  ;;  %v2948_v45 = vpop.f32.mrf.mxu1 }
 0x62f   : > { %v2936_v62 = vadd.f32 %v2935_v44, %v2923_v8 }
 0x631   : > { %v2949_v63 = vadd.f32 %v2948_v45, %v2936_v62 }
 0x632   : > { %v2911_v47 = vpop.f32.mrf.mxu2  ;;  %v2924_v48 = vpop.f32.mrf.mxu3 }
 0x636   : > { %v2937_v50 = vpop.f32.mrf.mxu0  ;;  %v2950_v51 = vpop.f32.mrf.mxu1 }
 0x63a   : > { %v2961_v53 = vpop.f32.mrf.mxu2  ;;  %v2974_v55 = vpop.f32.mrf.mxu3 }
 0x63b   : > { %v2962_v2 = vadd.f32 %v2961_v53, %v2949_v63 }
 0x63d   : > { %v2975_v3 = vadd.f32 %v2974_v55, %v2962_v2 }
 0x642   : > { %v2963_v59 = vpop.f32.mrf.mxu2  ;;  %v2976_v61 = vpop.f32.mrf.mxu3 }
 0x64e   : > { %v2987_v0 = vpop.f32.mrf.mxu0  ;;  %v3000_v1 = vpop.f32.mrf.mxu1 }
 0x64f   : > { %v2988_v5 = vadd.f32 %v2987_v0, %v2975_v3 }
 0x651   : > { %v3001_v9 = vadd.f32 %v3000_v1, %v2988_v5 }
 0x656   : > { %v2989_v6 = vpop.f32.mrf.mxu0  ;;  %v3002_v7 = vpop.f32.mrf.mxu1 }
 0x65a   : > { %v3013_v10 = vpop.f32.mrf.mxu2  ;;  %v3026_v11 = vpop.f32.mrf.mxu3 }
 0x65b   : > { %v3014_v12 = vadd.f32 %v3013_v10, %v3001_v9 }
 0x65d   : > { %v3027_v60 = vadd.f32 %v3026_v11, %v3014_v12 }
 0x65f   : > { %v3030_v13 = vadd.f32 %v3027_v60, %v4848_v4 }
 0x661   : > { %v3033_v14 = vsel %vm808_vm1, %v3030_v13, 0.0 }
 0x662   : > { %v3015_v15 = vpop.f32.mrf.mxu2  ;;  %v3028_v16 = vpop.f32.mrf.mxu3  ;;  %3034 = vadd.xlane.f32.xlu1 %v3033_v14 }
 0x6d5   : > { %v3035_v17 = vpop.xlane.xlu1 %3034 }
 0x6d6   : > { %v3036_v18 = vmul.f32 %v3035_v17, %v4791_v58 }
 0x6d8   : > { %v3037_v20 = vsub.f32 %v3030_v13, %v3036_v18 }
 0x6da   : > { %v3038_v21 = vmul.f32 %v3037_v20, %v3037_v20 }
 0x6dc   : > { %v3039_v54 = vsel %vm808_vm1, %v3038_v21, 0.0 }
 0x6dd   : > { %3040 = vadd.xlane.f32.xlu0 %v3039_v54 }
 0x750   : > { %v3041_v19 = vpop.xlane.xlu0 %3040 }
 0x751   : > { %v3042_v22 = vmul.f32 %v3041_v19, %v4791_v58 }
 0x753   : > { %v3043_v23 = vadd.f32 1e-05, %v3042_v22 }
 0x755   : > { %4364 = vrsqrt.f32 %v3043_v23  ;;  %vm3050_vm10 = vweird.f32 %v3043_v23 }
 0x75b   : > { %v4365_v4 = vpop.eup %4364 }
 0x75c   : > { %v3045_v24 = vmul.f32 %v4365_v4, %v3043_v23  ;;  %vm3051_vm9 = vweird.f32 %v4365_v4 }
 0x75d   : > { %vm3052_vm11 = vmor %vm3050_vm10, %vm3051_vm9 }
 0x75e   : > { %v3046_v25 = vmul.f32 %v4365_v4, %v3045_v24 }
 0x760   : > { %v3047_v26 = vmul.f32 0.5, %v3046_v25 }
 0x762   : > { %v3048_v27 = vsub.f32 1.5, %v3047_v26 }
 0x764   : > { %v3049_v28 = vmul.f32 %v4365_v4, %v3048_v27 }
 0x766   : > { %v3053_v30 = vsel %vm3052_vm11, %v4365_v4, %v3049_v28 }
 0x767   : > { %v3054_v32 = vmul.f32 %v3053_v30, %v3037_v20 }
 0x769   : > { %v3058_v34 = vmul.f32 %v4342_v29, %v3054_v32  ;;  %3067 = sbr.rel (%p4072_p1) target bundleno = 2306 (0x902), region = 96 }
 0x76b   : > { %v3062_v35 = vadd.f32 %v4343_v31, %v3058_v34 }
 0x76d   : > { %3063 = vst.msk [vmem:[#allocation2] sm:$0xff] %vm808_vm1, %v3062_v35 }
 0x76e   : > { %v3070_v33 = vsel %vm808_vm1, %v3062_v35, 0.0  ;;  %v4259_v41 = vld [vmem:[%s5222_s13 + $0x8] sm:$0xff]  ;;  %v4258_v42 = vld [vmem:[%s5222_s13] sm:$0xff] }
 0x76f   : > { %3071 = vadd.xlane.f32.xlu0 %v3070_v33  ;;  %3130 = vmatpush.bf16.msra.mxu0 %v4259_v41  ;;  %v4366_v52 = vld [vmem:[%s5223_s23] ss:$0 sm:$0xff] }
 0x770   : > { %v4368_v59 = vld [vmem:[%s5225_s26] ss:$0 sm:$0xff] }
 0x773   : > { %3131 = vmatpush.bf16.msra.mxu0 %v4258_v42 }
 0x7e2   : > { %v3072_v36 = vpop.xlane.xlu0 %3071 }
 0x7e3   : > { %v3073_v37 = vmul.f32 %v3072_v36, %v4791_v58 }
 0x7e5   : > { %v3074_v38 = vsub.f32 %v3062_v35, %v3073_v37 }
 0x7e7   : > { %v3075_v39 = vmul.f32 %v3074_v38, %v3074_v38 }
 0x7e9   : > { %v3076_v40 = vsel %vm808_vm1, %v3075_v39, 0.0 }
 0x7ea   : > { %3077 = vadd.xlane.f32.xlu0 %v3076_v40 }
 0x85d   : > { %v3078_v43 = vpop.xlane.xlu0 %3077 }
 0x85e   : > { %v3079_v44 = vmul.f32 %v3078_v43, %v4791_v58  ;;  %v4367_v58 = vld [vmem:[%s5224_s15] ss:$0 sm:$0xff] }
 0x860   : > { %v3080_v45 = vadd.f32 1e-05, %v3079_v44 }
 0x862   : > { %4369 = vrsqrt.f32 %v3080_v45  ;;  %vm3087_vm13 = vweird.f32 %v3080_v45 }
 0x868   : > { %v4370_v46 = vpop.eup %4369 }
 0x869   : > { %v3082_v47 = vmul.f32 %v4370_v46, %v3080_v45  ;;  %vm3088_vm12 = vweird.f32 %v4370_v46 }
 0x86a   : > { %vm3089_vm14 = vmor %vm3087_vm13, %vm3088_vm12 }
 0x86b   : > { %v3083_v48 = vmul.f32 %v4370_v46, %v3082_v47 }
 0x86d   : > { %v3084_v49 = vmul.f32 0.5, %v3083_v48 }
 0x86f   : > { %v3085_v50 = vsub.f32 1.5, %v3084_v49 }
 0x871   : > { %v3086_v51 = vmul.f32 %v4370_v46, %v3085_v50 }
 0x873   : > { %v3090_v53 = vsel %vm3089_vm14, %v4370_v46, %v3086_v51 }
 0x874   : > { %v3091_v55 = vmul.f32 %v3090_v53, %v3074_v38 }
 0x876   : > { %v3095_v56 = vmul.f32 %v4366_v52, %v3091_v55 }
 0x878   : > { %v3099_v57 = vadd.f32 %v4367_v58, %v3095_v56 }
 0x87a   : > { %v3100_v8 = vpack.c.bf16 %v3099_v57, %v3099_v57 }
 0x87c   : > { %4081 = vmatmul.msk.bf16.vlgmr.msra.gmra.mxu0 %vm808_vm1, %v3100_v8 }
 0x8f9   : > { %v3133_v61 = vpop.f32.mrf.mxu0 }
 0x8fa   : > { %v3134_v62 = vadd.f32 %v4368_v59, %v3133_v61 }
 0x8fc   : > { %3137 = vst [vmem:[%s703_s25] sm:$0xff] %v3134_v62 }
 0x901   : > { %v3135_v63 = vpop.f32.mrf.mxu0 }
 0x902 PF: > { %s5226_s3 = sld [smem:[#allocation9_spill]]  ;;  %s3151_s0 = sshll.u32 %s703_s25, 4  ;;  %s3152_s0 = int_to_ptr.vmem [resolvable:$true] %s3151_s0 }
 0x903   : > { %s5227_s14 = sld [smem:[#allocation7_spill]] }
 0x904   : > { %s5229_s24 = sld [smem:[#allocation28_spill]] }
 0x908   : > { %s4083_s21 = sshll.u32 %s5226_s3, 3 }
 0x909   : > { %s5231_s20 = sand.u32 1, %s5227_s14  }
 0x90a   : > { %s5230_s2 = smov %s5229_s24  ;;  %s3149_s16 = scalar_lea.hbm %s5229_s24, %s4083_s21 }
 0x90b   : > { %s3153_s27 = sshll.u32 %s3149_s16, 4  ;;  %s3139_s23 = scalar_lea.sflag [#allocation4], %s5231_s20  ;;  %s3154_s27 = int_to_ptr.hbm [resolvable:$true] %s3153_s27 }
 0x90c   : > { %s4385_s18 = sshra.s32 %s3154_s27, 4  ;;  %s4391_s28 = scalar_lea.hbm %s5230_s2, 16  ;;  %s4386_s18 = int_to_ptr.hbm [resolvable:$true] %s4385_s18 }
 0x90d   : > { %s4387_s17 = scalar_lea.hbm %s4386_s18, 8  ;;  %p4392_p6 = scmp.lt.s32.totalorder %s4386_s18, %s5230_s2 }
 0x90e   : > { %p4388_p2 = scmp.ne.s32.totalorder %s4386_s18, %s4387_s17  ;;  %p4393_p7 = scmp.lt.s32.totalorder %s4391_s28, %s4387_s17 }
 0x910   : > { %p4389_p4 = pnand %p4388_p2, %p4609_p3  ;;  %p4394_p8 = por %p4393_p7, %p4392_p6 }
 0x912   : > { %p4390_p5 = pneg %p4389_p4 }
 0x914   : > { %p4395_p10 = pnand %p4394_p8, %p4390_p5 }
 0x916   : > { %4398 = shalt.err (!%p4395_p10)
}
 0x917   : > { %4260 = dma.vmem_to_hbm [thread:$0]  (%p4609_p3), %s3152_s0, 128, %s3154_s27, %s3139_s23  }
 0x918 PF: > { %s5232_s29 = sld [smem:[#allocation12_spill]] }
 0x919   : > { %s5233_s25 = sld [smem:[#allocation6_spill]] }
 0x91e   : > { %p4266_p11 = scmp.ge.s32.totalorder %s5232_s29, 2 }
 0x91f   : > { %s3165_s21 = sand.u32 1, %s5233_s25  }
 0x920   : > { %p4263_p12 = pnand %p4266_p11, %p4619_p9  ;;  %s3166_s1 = scalar_lea.sflag [#allocation4], %s3165_s21 }
 0x922   : > { %p4264_p13 = pneg %p4263_p12 }
 0x924   : > { %4432 = dma.done.wait (%p4264_p13), %s3166_s1, 128  }
 0x925   : > { %4434 = vsyncadd (%p4264_p13), %s3166_s1, 4294967168  ;;  %s30_s30 = sadd.s32 1, %s5232_s29   ;;  %s5235_s24 = sld [smem:[#allocation7_spill]] }
 0x926   : > { %p27_p0 = scmp.ge.s32.totalorder %s30_s30, 6   ;;  %s5236_s25 = sld [smem:[#allocation8_spill]] }
 0x927   : > { %s5237_s26 = sld [smem:[#allocation17_spill]] }
 0x928   : > { %s5238_s27 = sld [smem:[#allocation10_spill]]  ;;  %29 = sbr.rel (!%p27_p0) target bundleno = 15 (0xf), region = 167 }
 0x929   : > { %s5239_s28 = sld [smem:[#allocation11_spill]] }
 0x92a   : > { %s5240_s29 = sld [smem:[#allocation13_spill]] }
 0x92b   : > { %s5241_s0 = sld [smem:[#allocation15_spill]] }
 0x92d   :  { %3172 = vsyncpa [#allocation4], 1 }
 0x92e   :  { %3174 = vsyncpa [#allocation4 + $0x1], 1 }

</bundles_post_ra>
